<compile_context>
chip_gen: v5e
topology: v5e:2x2
jax: 0.10.0
libtpu: 0.0.40
codegen_flags: <defaults>
</compile_context>

<pallas_src>
from functools import partial

import jax
import jax.numpy as jnp
from jax.experimental import pallas as pl
from jax.experimental.pallas import tpu as pltpu


def _round_up(a, b):
    return (a + b - 1) // b * b


def _pick_tiles(n, tm_target, tk_target):
    """Pick (n_pad, tm, tk).

    Small graphs (<= tm_target rows after 128-padding): whole-width reduction
    tile, two row blocks when possible (v7x has 2 TensorCores).
    Large graphs: pad N to a 512 granule so tiles never collapse to 128-wide
    (the ~3x HBM-efficiency cliff), tm in {128,256,512}, tk the largest
    512-multiple divisor of n_pad up to tk_target.
    """
    n128 = _round_up(n, 128)
    if n128 <= max(tm_target, 128):
        n_pad = n128
        tm = n_pad // 2 if n_pad >= 256 else n_pad   # >= 2 row blocks for v7x
        tk = n_pad
        return n_pad, tm, tk
    n_pad = _round_up(n, 512)
    tm = 512 if tm_target >= 512 else (256 if tm_target >= 256 else 128)
    tk = 512
    for cand in (2048, 1536, 1024, 512):
        if cand <= min(tk_target, n_pad) and n_pad % cand == 0:
            tk = cand
            break
    return n_pad, tm, tk


def _vmem_budget_bytes():
    """~75% of physical VMEM; falls back to 48 MiB (safe on v7x's 64 MiB)."""
    try:
        cap = int(pltpu.get_tpu_info().vmem_capacity_bytes)
    except Exception:
        cap = 64 * 1024 * 1024
    return cap * 3 // 4


# ---------------------------------------------------------------------------
# Kernel 1: first Chebyshev term (i == 1), fused with its projection share.
#   acc  = A @ (dinv * X0)                (reduction over column-tile axis)
#   X1   = alpha * dinv_rows * acc + beta * X0_rows
#   proj = bias + X0_rows @ W0 + X1 @ W1
# Grid: (row blocks [parallel], adjacency-column blocks [arbitrary, last]).
# ---------------------------------------------------------------------------
def _cheb_first_kernel(coef_ref, adj_ref, xc_ref, x0_ref, dinv_ref, w_ref, b_ref,
                       x1_ref, p_ref, acc_ref, *, tk, f_pad, xc_resident):
    c = pl.program_id(1)

    @pl.when(c == 0)
    def _init():
        acc_ref[...] = jnp.zeros_like(acc_ref)

    a = adj_ref[...]                                   # (tm, tk) raw adjacency
    if xc_resident:
        off = pl.multiple_of(c * tk, tk)
        xc = xc_ref[pl.ds(off, tk), :]                 # slice of VMEM-resident block
    else:
        xc = xc_ref[...]                               # streamed (tk, f_pad) block
    acc_ref[...] += jnp.dot(a, xc, preferred_element_type=jnp.float32)

    @pl.when(c == pl.num_programs(1) - 1)
    def _finalize():
        alpha = coef_ref[0]                            # -2 / lambda_max
        beta = coef_ref[1]                             #  2 / lambda_max - 1
        x0 = x0_ref[...]
        x1 = alpha * (dinv_ref[...] * acc_ref[...]) + beta * x0
        x1_ref[...] = x1.astype(x1_ref.dtype)
        p = b_ref[...] + jnp.dot(x0, w_ref[:f_pad, :],
                                 preferred_element_type=jnp.float32)
        p = p + jnp.dot(x1, w_ref[f_pad:2 * f_pad, :],
                        preferred_element_type=jnp.float32)
        p_ref[...] = p.astype(p_ref.dtype)


# ---------------------------------------------------------------------------
# Kernel 2: Chebyshev term i >= 2, fused with its projection share.
#   X_i  = alpha * dinv_rows * (A @ (dinv * X_{i-1})) + beta * X_{i-1} + gamma * X_{i-2}
#   proj = proj_prev + X_i @ W_i          (proj_prev aliased to the proj output)
# ---------------------------------------------------------------------------
def _cheb_later_kernel(coef_ref, adj_ref, xc_ref, xr_ref, xpp_ref, dinv_ref, w_ref,
                       pprev_ref, xi_ref, p_ref, acc_ref,
                       *, tk, f_pad, term, xc_resident):
    c = pl.program_id(1)

    @pl.when(c == 0)
    def _init():
        acc_ref[...] = jnp.zeros_like(acc_ref)

    a = adj_ref[...]
    if xc_resident:
        off = pl.multiple_of(c * tk, tk)
        xc = xc_ref[pl.ds(off, tk), :]
    else:
        xc = xc_ref[...]
    acc_ref[...] += jnp.dot(a, xc, preferred_element_type=jnp.float32)

    @pl.when(c == pl.num_programs(1) - 1)
    def _finalize():
        alpha = coef_ref[0]                            # -4 / lambda_max
        beta = coef_ref[1]                             #  4 / lambda_max - 2
        gamma = coef_ref[2]                            # -1
        xi = (alpha * (dinv_ref[...] * acc_ref[...])
              + beta * xr_ref[...] + gamma * xpp_ref[...])
        xi_ref[...] = xi.astype(xi_ref.dtype)
        p_ref[...] = (pprev_ref[...]
                      + jnp.dot(xi, w_ref[term * f_pad:(term + 1) * f_pad, :],
                                preferred_element_type=jnp.float32)
                      ).astype(p_ref.dtype)


def _xc_spec(n_pad, f_pad, tk, xc_resident):
    if xc_resident:
        return pl.BlockSpec((n_pad, f_pad), lambda r, c: (0, 0))   # VMEM-resident
    return pl.BlockSpec((tk, f_pad), lambda r, c: (c, 0))          # streamed


def _cheb_first(coef, adj_pad, xc, x0, dinv_col, w_pad, b_pad,
                *, tm, tk, xc_resident, vmem_limit):
    n_pad = adj_pad.shape[0]
    f_pad = x0.shape[1]
    fo_pad = w_pad.shape[1]
    grid = (n_pad // tm, n_pad // tk)
    kernel = partial(_cheb_first_kernel, tk=tk, f_pad=f_pad, xc_resident=xc_resident)
    cost = pl.CostEstimate(
        flops=2 * n_pad * n_pad * f_pad + 4 * n_pad * f_pad * fo_pad,
        transcendentals=0,
        bytes_accessed=(n_pad * n_pad * adj_pad.dtype.itemsize
                        + n_pad * f_pad * (xc.dtype.itemsize + 2 * 4)
                        + n_pad * (fo_pad + 1) * 4
                        + int(w_pad.size) * 4),
    )
    return pl.pallas_call(
        kernel,
        out_shape=(jax.ShapeDtypeStruct((n_pad, f_pad), jnp.float32),
                   jax.ShapeDtypeStruct((n_pad, fo_pad), jnp.float32)),
        grid=grid,
        in_specs=[
            pl.BlockSpec(memory_space=pltpu.MemorySpace.SMEM),           # [alpha, beta]
            pl.BlockSpec((tm, tk), lambda r, c: (r, c)),                 # adjacency tile
            _xc_spec(n_pad, f_pad, tk, xc_resident),                     # dinv * X0
            pl.BlockSpec((tm, f_pad), lambda r, c: (r, 0)),              # X0 output rows
            pl.BlockSpec((tm, 1), lambda r, c: (r, 0)),                  # dinv output rows
            pl.BlockSpec((w_pad.shape[0], fo_pad), lambda r, c: (0, 0)), # W slab (resident)
            pl.BlockSpec((1, fo_pad), lambda r, c: (0, 0)),              # bias
        ],
        out_specs=(pl.BlockSpec((tm, f_pad), lambda r, c: (r, 0)),       # X1
                   pl.BlockSpec((tm, fo_pad), lambda r, c: (r, 0))),     # proj
        scratch_shapes=[pltpu.VMEM((tm, f_pad), jnp.float32)],
        compiler_params=pltpu.CompilerParams(
            dimension_semantics=("parallel", "arbitrary"),
            vmem_limit_bytes=vmem_limit),
        cost_estimate=cost,
    )(coef, adj_pad, xc, x0, dinv_col, w_pad, b_pad)


def _cheb_later(coef, adj_pad, xc, xr, xpp, dinv_col, w_pad, p_prev,
                *, term, tm, tk, xc_resident, vmem_limit):
    n_pad = adj_pad.shape[0]
    f_pad = xr.shape[1]
    fo_pad = w_pad.shape[1]
    grid = (n_pad // tm, n_pad // tk)
    kernel = partial(_cheb_later_kernel, tk=tk, f_pad=f_pad, term=term,
                     xc_resident=xc_resident)
    cost = pl.CostEstimate(
        flops=2 * n_pad * n_pad * f_pad + 2 * n_pad * f_pad * fo_pad,
        transcendentals=0,
        bytes_accessed=(n_pad * n_pad * adj_pad.dtype.itemsize
                        + n_pad * f_pad * (xc.dtype.itemsize + 3 * 4)
                        + n_pad * (2 * fo_pad + 1) * 4
                        + int(w_pad.size) * 4),
    )
    return pl.pallas_call(
        kernel,
        out_shape=(jax.ShapeDtypeStruct((n_pad, f_pad), jnp.float32),
                   jax.ShapeDtypeStruct((n_pad, fo_pad), jnp.float32)),
        grid=grid,
        in_specs=[
            pl.BlockSpec(memory_space=pltpu.MemorySpace.SMEM),           # [alpha, beta, gamma]
            pl.BlockSpec((tm, tk), lambda r, c: (r, c)),                 # adjacency tile
            _xc_spec(n_pad, f_pad, tk, xc_resident),                     # dinv * X_{i-1}
            pl.BlockSpec((tm, f_pad), lambda r, c: (r, 0)),              # X_{i-1} rows
            pl.BlockSpec((tm, f_pad), lambda r, c: (r, 0)),              # X_{i-2} rows
            pl.BlockSpec((tm, 1), lambda r, c: (r, 0)),                  # dinv rows
            pl.BlockSpec((w_pad.shape[0], fo_pad), lambda r, c: (0, 0)), # W slab (resident)
            pl.BlockSpec((tm, fo_pad), lambda r, c: (r, 0)),             # running proj
        ],
        out_specs=(pl.BlockSpec((tm, f_pad), lambda r, c: (r, 0)),       # X_i
                   pl.BlockSpec((tm, fo_pad), lambda r, c: (r, 0))),     # proj
        scratch_shapes=[pltpu.VMEM((tm, f_pad), jnp.float32)],
        input_output_aliases={7: 1},   # running projection carried in-place
        compiler_params=pltpu.CompilerParams(
            dimension_semantics=("parallel", "arbitrary"),
            vmem_limit_bytes=vmem_limit),
        cost_estimate=cost,
    )(coef, adj_pad, xc, xr, xpp, dinv_col, w_pad, p_prev)


# --------------------------------------------------------------------------
# k == 1 fallback: out = X0 @ W + b (no recurrence, single lane-dense matmul).
# --------------------------------------------------------------------------
def _proj_only_kernel(x_ref, w_ref, b_ref, o_ref):
    o_ref[...] = (jnp.dot(x_ref[...], w_ref[...],
                          preferred_element_type=jnp.float32)
                  + b_ref[...]).astype(o_ref.dtype)


def _proj_only(x0, w_pad, b_pad, *, tm):
    n_pad, f_pad = x0.shape
    fo_pad = w_pad.shape[1]
    return pl.pallas_call(
        _proj_only_kernel,
        out_shape=jax.ShapeDtypeStruct((n_pad, fo_pad), jnp.float32),
        grid=(n_pad // tm,),
        in_specs=[pl.BlockSpec((tm, f_pad), lambda r: (r, 0)),
                  pl.BlockSpec((f_pad, fo_pad), lambda r: (0, 0)),
                  pl.BlockSpec((1, fo_pad), lambda r: (0, 0))],
        out_specs=pl.BlockSpec((tm, fo_pad), lambda r: (r, 0)),
        compiler_params=pltpu.CompilerParams(dimension_semantics=("parallel",)),
    )(x0, w_pad, b_pad)


# ---------------------------------------------------------------------------
# Wrapper: ChebConvModel.forward(graph, inputs) with the graph as a dense
# adjacency matrix.
# ---------------------------------------------------------------------------
def _cheb_conv_impl(adj, x, w, b, lambda_max, *, k,
                    adj_dtype=jnp.bfloat16, tm_target=512, tk_target=2048):
    n, f_in = x.shape
    f_out = w.shape[1]
    assert w.shape[0] == k * f_in

    n_pad, tm, tk = _pick_tiles(n, tm_target, tk_target)
    f_pad = _round_up(f_in, 128)     # lane-dense feature dim
    fo_pad = _round_up(f_out, 128)   # lane-dense output dim

    adj_itemsize = jnp.dtype(adj_dtype).itemsize
    # MXU feature dtype: bf16 whenever the adjacency is stored narrow (the 0/1
    # adjacency itself is exact in bf16 / fp8); f32 path keeps exact parity.
    x_mxu_dtype = jnp.float32 if adj_itemsize >= 4 else jnp.bfloat16
    xc_itemsize = jnp.dtype(x_mxu_dtype).itemsize

    # --- one-time setup glue (XLA): degree scaling, padding, coefficients ---
    adj_f32 = adj.astype(jnp.float32)
    in_deg = jnp.clip(jnp.sum(adj_f32, axis=1), 1.0, None)
    dinv = jnp.power(in_deg, -0.5).astype(jnp.float32)

    adj_pad = (jnp.zeros((n_pad, n_pad), adj_dtype)
               .at[:n, :n].set(adj.astype(adj_dtype)))          # RAW adjacency
    dinv_col = jnp.zeros((n_pad, 1), jnp.float32).at[:n, 0].set(dinv)
    x0 = (jnp.zeros((n_pad, f_pad), jnp.float32)
          .at[:n, :f_in].set(x.astype(jnp.float32)))
    w_pad = (jnp.zeros((k, f_pad, fo_pad), jnp.float32)
             .at[:, :f_in, :f_out].set(w.astype(jnp.float32).reshape(k, f_in, f_out))
             .reshape(k * f_pad, fo_pad))
    b_pad = (jnp.zeros((1, fo_pad), jnp.float32)
             .at[:, :f_out].set(b.reshape(1, f_out).astype(jnp.float32)))

    if k == 1:
        out_pad = _proj_only(x0, w_pad, b_pad, tm=tm)
        return out_pad[:n, :f_out]

    re_norm = (2.0 / jnp.asarray(lambda_max, jnp.float32)).reshape(())

    # --- VMEM budget: decide X_prev residency, set scoped limit explicitly ---
    def _vmem_est(resident):
        xc_rows = n_pad if resident else tk
        est = 2 * tm * tk * adj_itemsize             # adjacency (double-buffered)
        est += 2 * xc_rows * f_pad * xc_itemsize     # dinv * X_prev operand
        est += 2 * 2 * tm * f_pad * 4                # X_{i-1}, X_{i-2} row blocks
        est += 2 * tm * 128 * 4                      # dinv rows (lane-padded)
        est += 2 * k * f_pad * fo_pad * 4            # weight slab
        est += 2 * 8 * fo_pad * 4                    # bias (sublane-padded)
        est += 2 * tm * fo_pad * 4                   # running projection rows
        est += 2 * (tm * f_pad + tm * fo_pad) * 4    # X_i / proj outputs
        est += tm * f_pad * 4                        # f32 accumulator scratch
        return est

    budget = _vmem_budget_bytes()
    xc_resident = _vmem_est(True) * 5 // 4 <= budget
    vmem_limit = int(min(budget, max(2 * _vmem_est(xc_resident), 32 * 1024 * 1024)))

    # --- Chebyshev recurrence, projection fused into each term's finalize ----
    coef1 = jnp.stack([-re_norm, re_norm - 1.0])
    xc = (x0 * dinv_col).astype(x_mxu_dtype)
    x1, proj = _cheb_first(coef1, adj_pad, xc, x0, dinv_col, w_pad, b_pad,
                           tm=tm, tk=tk, xc_resident=xc_resident,
                           vmem_limit=vmem_limit)
    x_prevprev, x_prev = x0, x1

    coef_i = jnp.stack([-2.0 * re_norm, 2.0 * (re_norm - 1.0),
                        jnp.full((), -1.0, jnp.float32)])
    for i in range(2, k):
        xc = (x_prev * dinv_col).astype(x_mxu_dtype)
        x_new, proj = _cheb_later(coef_i, adj_pad, xc, x_prev, x_prevprev,
                                  dinv_col, w_pad, proj, term=i, tm=tm, tk=tk,
                                  xc_resident=xc_resident, vmem_limit=vmem_limit)
        x_prevprev, x_prev = x_prev, x_new

    return proj[:n, :f_out]


cheb_conv = jax.jit(_cheb_conv_impl,
                    static_argnames=("k", "adj_dtype", "tm_target", "tk_target"))


def cheb_conv_reference(adj, x, w, b, lambda_max, k):
    """Pure-JAX reference mirroring DGL ChebConv."""
    in_deg = jnp.clip(jnp.sum(adj, axis=1), 1.0, None)
    dinv = jnp.power(in_deg, -0.5)[:, None]
    re_norm = 2.0 / lambda_max

    def lap(f):
        return (adj @ (f * dinv)) * dinv

    x0 = x
    xs = [x0]
    x1 = x0
    if k > 1:
        x1 = -re_norm * lap(x0) + x0 * (re_norm - 1.0)
        xs.append(x1)
    for _ in range(2, k):
        xi = -2.0 * re_norm * lap(x1) + x1 * 2.0 * (re_norm - 1.0) - x0
        xs.append(xi)
        x0, x1 = x1, xi
    xt = jnp.concatenate(xs, axis=1)
    return xt @ w + b


if __name__ == "__main__":
    N, F_IN, F_OUT, K = 16, 8, 4, 3

    key = jax.random.PRNGKey(0)
    k_adj, k_x, k_w, k_b = jax.random.split(key, 4)

    # Deterministic small undirected graph (symmetric binary adjacency, no self loops).
    a = (jax.random.uniform(k_adj, (N, N)) < 0.3).astype(jnp.float32)
    adj = jnp.maximum(a, a.T) * (1.0 - jnp.eye(N, dtype=jnp.float32))

    # Node features and ChebConv parameters
    # (nn.Linear(K * in_feats, out_feats) => W: [K*F_IN, F_OUT], b: [1, F_OUT]).
    x = jax.random.normal(k_x, (N, F_IN), dtype=jnp.float32)
    w = 0.1 * jax.random.normal(k_w, (K * F_IN, F_OUT), dtype=jnp.float32)
    b = 0.1 * jax.random.normal(k_b, (1, F_OUT), dtype=jnp.float32)

    # lambda_max of the symmetric-normalized Laplacian (dgl.laplacian_lambda_max
    # equivalent) — plain JAX setup glue.
    in_deg = jnp.clip(jnp.sum(adj, axis=1), 1.0, None)
    dinv_v = jnp.power(in_deg, -0.5)
    lap_mat = jnp.eye(N, dtype=jnp.float32) - dinv_v[:, None] * adj * dinv_v[None, :]
    lambda_max = jnp.max(jnp.linalg.eigvalsh(lap_mat))

    ref = cheb_conv_reference(adj, x, w, b, lambda_max, K)

    # Default path: binary adjacency stored bf16 (exact), bf16 MXU features,
    # f32 recurrence/accumulation.
    out = jax.block_until_ready(cheb_conv(adj, x, w, b, lambda_max, k=K))
    assert out.shape == (N, F_OUT)
    assert jnp.allclose(out, ref, atol=5e-2, rtol=5e-2), "bf16 mismatch vs. reference"

    # Full-f32 opt-in path: tight parity with the reference.
    out_f32 = jax.block_until_ready(
        cheb_conv(adj, x, w, b, lambda_max, k=K, adj_dtype=jnp.float32))
    assert jnp.allclose(out_f32, ref, atol=1e-4, rtol=1e-4), "f32 mismatch vs. reference"

    # k=2 (the module's default) exercises the single-launch fused path.
    w2 = w[:2 * F_IN, :]
    ref2 = cheb_conv_reference(adj, x, w2, b, lambda_max, 2)
    out2 = jax.block_until_ready(cheb_conv(adj, x, w2, b, lambda_max, k=2))
    assert jnp.allclose(out2, ref2, atol=5e-2, rtol=5e-2), "k=2 mismatch vs. reference"

    print("KERNEL_OK")
</pallas_src>

<mosaic_0001>
module attributes {stable_mosaic.version = 11 : i64} {
  func.func @_cheb_first_kernel(%arg0: i32, %arg1: i32, %arg2: memref<2xf32, #tpu.memory_space<smem>>, %arg3: memref<128x128xbf16, #tpu.memory_space<vmem>>, %arg4: memref<128x128xbf16, #tpu.memory_space<vmem>>, %arg5: memref<128x128xf32, #tpu.memory_space<vmem>>, %arg6: memref<128x1xf32, #tpu.memory_space<vmem>>, %arg7: memref<384x128xf32, #tpu.memory_space<vmem>>, %arg8: memref<1x128xf32, #tpu.memory_space<vmem>>, %arg9: memref<128x128xf32, #tpu.memory_space<vmem>>, %arg10: memref<128x128xf32, #tpu.memory_space<vmem>>, %arg11: memref<128x128xf32, #tpu.memory_space<vmem>>) attributes {dimension_semantics = [#tpu.dimension_semantics<parallel>, #tpu.dimension_semantics<arbitrary>], iteration_bounds = array<i64: 1, 1>, scalar_prefetch = 0 : i64, scratch_operands = 1 : i64, tpu.core_type = #tpu.core_type<tc>, window_params = [{transform_indices = @transform_0, window_bounds = array<i64: 2>}, {transform_indices = @transform_1, window_bounds = array<i64: 128, 128>}, {pipeline_mode = #tpu.pipeline_mode<synchronous>, transform_indices = @transform_2, window_bounds = array<i64: 128, 128>}, {transform_indices = @transform_3, window_bounds = array<i64: 128, 128>}, {transform_indices = @transform_4, window_bounds = array<i64: 128, 1>}, {pipeline_mode = #tpu.pipeline_mode<synchronous>, transform_indices = @transform_5, window_bounds = array<i64: 384, 128>}, {pipeline_mode = #tpu.pipeline_mode<synchronous>, transform_indices = @transform_6, window_bounds = array<i64: 1, 128>}, {transform_indices = @transform_7, window_bounds = array<i64: 128, 128>}, {transform_indices = @transform_8, window_bounds = array<i64: 128, 128>}]} {
    %c0_i32 = arith.constant 0 : i32
    %0 = arith.cmpi eq, %arg1, %c0_i32 : i32
    %1 = arith.extui %0 : i1 to i32
    %c0_i32_0 = arith.constant 0 : i32
    %2 = arith.cmpi ne, %1, %c0_i32_0 : i32
    scf.if %2 {
      %cst_9 = arith.constant 0.000000e+00 : f32
      %15 = vector.broadcast %cst_9 : f32 to vector<128x128xf32>
      %c0_10 = arith.constant 0 : index
      %c0_11 = arith.constant 0 : index
      %16 = vector.load %arg11[%c0_10, %c0_11] : memref<128x128xf32, #tpu.memory_space<vmem>>, vector<128x128xf32>
      tpu.vector_store %arg11[%c0_10, %c0_11], %15 {strides = array<i32>} : memref<128x128xf32, #tpu.memory_space<vmem>>, vector<128x128xf32>,
    } else {
    }
    %c0 = arith.constant 0 : index
    %c0_1 = arith.constant 0 : index
    %3 = vector.load %arg3[%c0, %c0_1] : memref<128x128xbf16, #tpu.memory_space<vmem>>, vector<128x128xbf16>
    %c128_i32 = arith.constant 128 : i32
    %4 = arith.muli %arg1, %c128_i32 : i32
    %5 = tpu.assume_multiple %4, 128 : i32
    %6 = arith.index_cast %5 : i32 to index
    %c0_2 = arith.constant 0 : index
    %7 = vector.load %arg4[%6, %c0_2] : memref<128x128xbf16, #tpu.memory_space<vmem>>, vector<128x128xbf16>
    %c0_3 = arith.constant 0 : index
    %c0_4 = arith.constant 0 : index
    %8 = vector.load %arg11[%c0_3, %c0_4] : memref<128x128xf32, #tpu.memory_space<vmem>>, vector<128x128xf32>
    %cst = arith.constant dense<0.000000e+00> : vector<128x128xf32>
    %9 = tpu.matmul %3, %7, %cst {dimension_numbers = #tpu.dot_dimension_numbers<[1], [0], [0], [1], [0, 0, 1, 1], [], []>} : vector<128x128xbf16>, vector<128x128xbf16>, vector<128x128xf32> -> vector<128x128xf32>
    %10 = arith.addf %8, %9 : vector<128x128xf32>
    %c0_5 = arith.constant 0 : index
    %c0_6 = arith.constant 0 : index
    %11 = vector.load %arg11[%c0_5, %c0_6] : memref<128x128xf32, #tpu.memory_space<vmem>>, vector<128x128xf32>
    tpu.vector_store %arg11[%c0_5, %c0_6], %10 {strides = array<i32>} : memref<128x128xf32, #tpu.memory_space<vmem>>, vector<128x128xf32>,
    %c0_i32_7 = arith.constant 0 : i32
    %12 = arith.cmpi eq, %arg1, %c0_i32_7 : i32
    %13 = arith.extui %12 : i1 to i32
    %c0_i32_8 = arith.constant 0 : i32
    %14 = arith.cmpi ne, %13, %c0_i32_8 : i32
    scf.if %14 {
      %c0_9 = arith.constant 0 : index
      %15 = memref.load %arg2[%c0_9] : memref<2xf32, #tpu.memory_space<smem>>
      %c1 = arith.constant 1 : index
      %16 = memref.load %arg2[%c1] : memref<2xf32, #tpu.memory_space<smem>>
      %c0_10 = arith.constant 0 : index
      %c0_11 = arith.constant 0 : index
      %17 = vector.load %arg5[%c0_10, %c0_11] : memref<128x128xf32, #tpu.memory_space<vmem>>, vector<128x128xf32>
      %c0_12 = arith.constant 0 : index
      %c0_13 = arith.constant 0 : index
      %18 = vector.load %arg6[%c0_12, %c0_13] : memref<128x1xf32, #tpu.memory_space<vmem>>, vector<128x1xf32>
      %c0_14 = arith.constant 0 : index
      %c0_15 = arith.constant 0 : index
      %19 = vector.load %arg11[%c0_14, %c0_15] : memref<128x128xf32, #tpu.memory_space<vmem>>, vector<128x128xf32>
      %20 = vector.broadcast %18 : vector<128x1xf32> to vector<128x128xf32>
      %21 = arith.mulf %20, %19 : vector<128x128xf32>
      %22 = vector.broadcast %15 : f32 to vector<128x128xf32>
      %23 = arith.mulf %22, %21 : vector<128x128xf32>
      %24 = vector.broadcast %16 : f32 to vector<128x128xf32>
      %25 = arith.mulf %24, %17 : vector<128x128xf32>
      %26 = arith.addf %23, %25 : vector<128x128xf32>
      %c0_16 = arith.constant 0 : index
      %c0_17 = arith.constant 0 : index
      %27 = vector.load %arg9[%c0_16, %c0_17] : memref<128x128xf32, #tpu.memory_space<vmem>>, vector<128x128xf32>
      tpu.vector_store %arg9[%c0_16, %c0_17], %26 {strides = array<i32>} : memref<128x128xf32, #tpu.memory_space<vmem>>, vector<128x128xf32>,
      %c0_18 = arith.constant 0 : index
      %c0_19 = arith.constant 0 : index
      %28 = vector.load %arg8[%c0_18, %c0_19] : memref<1x128xf32, #tpu.memory_space<vmem>>, vector<1x128xf32>
      %c0_20 = arith.constant 0 : index
      %c0_21 = arith.constant 0 : index
      %29 = vector.load %arg7[%c0_20, %c0_21] : memref<384x128xf32, #tpu.memory_space<vmem>>, vector<128x128xf32>
      %cst_22 = arith.constant dense<0.000000e+00> : vector<128x128xf32>
      %30 = tpu.matmul %17, %29, %cst_22 {dimension_numbers = #tpu.dot_dimension_numbers<[1], [0], [0], [1], [0, 0, 1, 1], [], []>} : vector<128x128xf32>, vector<128x128xf32>, vector<128x128xf32> -> vector<128x128xf32>
      %31 = vector.broadcast %28 : vector<1x128xf32> to vector<128x128xf32>
      %32 = arith.addf %31, %30 : vector<128x128xf32>
      %c128 = arith.constant 128 : index
      %c0_23 = arith.constant 0 : index
      %33 = vector.load %arg7[%c128, %c0_23] : memref<384x128xf32, #tpu.memory_space<vmem>>, vector<128x128xf32>
      %cst_24 = arith.constant dense<0.000000e+00> : vector<128x128xf32>
      %34 = tpu.matmul %26, %33, %cst_24 {dimension_numbers = #tpu.dot_dimension_numbers<[1], [0], [0], [1], [0, 0, 1, 1], [], []>} : vector<128x128xf32>, vector<128x128xf32>, vector<128x128xf32> -> vector<128x128xf32>
      %35 = arith.addf %32, %34 : vector<128x128xf32>
      %c0_25 = arith.constant 0 : index
      %c0_26 = arith.constant 0 : index
      %36 = vector.load %arg10[%c0_25, %c0_26] : memref<128x128xf32, #tpu.memory_space<vmem>>, vector<128x128xf32>
      tpu.vector_store %arg10[%c0_25, %c0_26], %35 {strides = array<i32>} : memref<128x128xf32, #tpu.memory_space<vmem>>, vector<128x128xf32>,
    } else {
    }
    return
  }
  func.func @transform_0(%arg0: i32, %arg1: i32) -> i32 {
    %c0_i32 = arith.constant 0 : i32
    %c0_i32_0 = arith.constant 0 : i32
    return %c0_i32 : i32
  }
  func.func @transform_1(%arg0: i32, %arg1: i32) -> (i32, i32) {
    %c0_i32 = arith.constant 0 : i32
    return %arg0, %arg1 : i32, i32
  }
  func.func @transform_2(%arg0: i32, %arg1: i32) -> (i32, i32) {
    %c0_i32 = arith.constant 0 : i32
    %c0_i32_0 = arith.constant 0 : i32
    %c0_i32_1 = arith.constant 0 : i32
    return %c0_i32, %c0_i32_0 : i32, i32
  }
  func.func @transform_3(%arg0: i32, %arg1: i32) -> (i32, i32) {
    %c0_i32 = arith.constant 0 : i32
    %c0_i32_0 = arith.constant 0 : i32
    return %arg0, %c0_i32 : i32, i32
  }
  func.func @transform_4(%arg0: i32, %arg1: i32) -> (i32, i32) {
    %c0_i32 = arith.constant 0 : i32
    %c0_i32_0 = arith.constant 0 : i32
    return %arg0, %c0_i32 : i32, i32
  }
  func.func @transform_5(%arg0: i32, %arg1: i32) -> (i32, i32) {
    %c0_i32 = arith.constant 0 : i32
    %c0_i32_0 = arith.constant 0 : i32
    %c0_i32_1 = arith.constant 0 : i32
    return %c0_i32, %c0_i32_0 : i32, i32
  }
  func.func @transform_6(%arg0: i32, %arg1: i32) -> (i32, i32) {
    %c0_i32 = arith.constant 0 : i32
    %c0_i32_0 = arith.constant 0 : i32
    %c0_i32_1 = arith.constant 0 : i32
    return %c0_i32, %c0_i32_0 : i32, i32
  }
  func.func @transform_7(%arg0: i32, %arg1: i32) -> (i32, i32) {
    %c0_i32 = arith.constant 0 : i32
    %c0_i32_0 = arith.constant 0 : i32
    return %arg0, %c0_i32 : i32, i32
  }
  func.func @transform_8(%arg0: i32, %arg1: i32) -> (i32, i32) {
    %c0_i32 = arith.constant 0 : i32
    %c0_i32_0 = arith.constant 0 : i32
    return %arg0, %c0_i32 : i32, i32
  }
}

module attributes {stable_mosaic.version = 11 : i64} {
  func.func @_cheb_later_kernel(%arg0: i32, %arg1: i32, %arg2: memref<3xf32, #tpu.memory_space<smem>>, %arg3: memref<128x128xbf16, #tpu.memory_space<vmem>>, %arg4: memref<128x128xbf16, #tpu.memory_space<vmem>>, %arg5: memref<128x128xf32, #tpu.memory_space<vmem>>, %arg6: memref<128x128xf32, #tpu.memory_space<vmem>>, %arg7: memref<128x1xf32, #tpu.memory_space<vmem>>, %arg8: memref<384x128xf32, #tpu.memory_space<vmem>>, %arg9: memref<128x128xf32, #tpu.memory_space<vmem>>, %arg10: memref<128x128xf32, #tpu.memory_space<vmem>>, %arg11: memref<128x128xf32, #tpu.memory_space<vmem>>, %arg12: memref<128x128xf32, #tpu.memory_space<vmem>>) attributes {dimension_semantics = [#tpu.dimension_semantics<parallel>, #tpu.dimension_semantics<arbitrary>], iteration_bounds = array<i64: 1, 1>, scalar_prefetch = 0 : i64, scratch_operands = 1 : i64, tpu.core_type = #tpu.core_type<tc>, window_params = [{transform_indices = @transform_0, window_bounds = array<i64: 3>}, {transform_indices = @transform_1, window_bounds = array<i64: 128, 128>}, {pipeline_mode = #tpu.pipeline_mode<synchronous>, transform_indices = @transform_2, window_bounds = array<i64: 128, 128>}, {transform_indices = @transform_3, window_bounds = array<i64: 128, 128>}, {transform_indices = @transform_4, window_bounds = array<i64: 128, 128>}, {transform_indices = @transform_5, window_bounds = array<i64: 128, 1>}, {pipeline_mode = #tpu.pipeline_mode<synchronous>, transform_indices = @transform_6, window_bounds = array<i64: 384, 128>}, {transform_indices = @transform_7, window_bounds = array<i64: 128, 128>}, {transform_indices = @transform_8, window_bounds = array<i64: 128, 128>}, {transform_indices = @transform_9, window_bounds = array<i64: 128, 128>}]} {
    %c0_i32 = arith.constant 0 : i32
    %0 = arith.cmpi eq, %arg1, %c0_i32 : i32
    %1 = arith.extui %0 : i1 to i32
    %c0_i32_0 = arith.constant 0 : i32
    %2 = arith.cmpi ne, %1, %c0_i32_0 : i32
    scf.if %2 {
      %cst_9 = arith.constant 0.000000e+00 : f32
      %15 = vector.broadcast %cst_9 : f32 to vector<128x128xf32>
      %c0_10 = arith.constant 0 : index
      %c0_11 = arith.constant 0 : index
      %16 = vector.load %arg12[%c0_10, %c0_11] : memref<128x128xf32, #tpu.memory_space<vmem>>, vector<128x128xf32>
      tpu.vector_store %arg12[%c0_10, %c0_11], %15 {strides = array<i32>} : memref<128x128xf32, #tpu.memory_space<vmem>>, vector<128x128xf32>,
    } else {
    }
    %c0 = arith.constant 0 : index
    %c0_1 = arith.constant 0 : index
    %3 = vector.load %arg3[%c0, %c0_1] : memref<128x128xbf16, #tpu.memory_space<vmem>>, vector<128x128xbf16>
    %c128_i32 = arith.constant 128 : i32
    %4 = arith.muli %arg1, %c128_i32 : i32
    %5 = tpu.assume_multiple %4, 128 : i32
    %6 = arith.index_cast %5 : i32 to index
    %c0_2 = arith.constant 0 : index
    %7 = vector.load %arg4[%6, %c0_2] : memref<128x128xbf16, #tpu.memory_space<vmem>>, vector<128x128xbf16>
    %c0_3 = arith.constant 0 : index
    %c0_4 = arith.constant 0 : index
    %8 = vector.load %arg12[%c0_3, %c0_4] : memref<128x128xf32, #tpu.memory_space<vmem>>, vector<128x128xf32>
    %cst = arith.constant dense<0.000000e+00> : vector<128x128xf32>
    %9 = tpu.matmul %3, %7, %cst {dimension_numbers = #tpu.dot_dimension_numbers<[1], [0], [0], [1], [0, 0, 1, 1], [], []>} : vector<128x128xbf16>, vector<128x128xbf16>, vector<128x128xf32> -> vector<128x128xf32>
    %10 = arith.addf %8, %9 : vector<128x128xf32>
    %c0_5 = arith.constant 0 : index
    %c0_6 = arith.constant 0 : index
    %11 = vector.load %arg12[%c0_5, %c0_6] : memref<128x128xf32, #tpu.memory_space<vmem>>, vector<128x128xf32>
    tpu.vector_store %arg12[%c0_5, %c0_6], %10 {strides = array<i32>} : memref<128x128xf32, #tpu.memory_space<vmem>>, vector<128x128xf32>,
    %c0_i32_7 = arith.constant 0 : i32
    %12 = arith.cmpi eq, %arg1, %c0_i32_7 : i32
    %13 = arith.extui %12 : i1 to i32
    %c0_i32_8 = arith.constant 0 : i32
    %14 = arith.cmpi ne, %13, %c0_i32_8 : i32
    scf.if %14 {
      %c0_9 = arith.constant 0 : index
      %15 = memref.load %arg2[%c0_9] : memref<3xf32, #tpu.memory_space<smem>>
      %c1 = arith.constant 1 : index
      %16 = memref.load %arg2[%c1] : memref<3xf32, #tpu.memory_space<smem>>
      %c2 = arith.constant 2 : index
      %17 = memref.load %arg2[%c2] : memref<3xf32, #tpu.memory_space<smem>>
      %c0_10 = arith.constant 0 : index
      %c0_11 = arith.constant 0 : index
      %18 = vector.load %arg7[%c0_10, %c0_11] : memref<128x1xf32, #tpu.memory_space<vmem>>, vector<128x1xf32>
      %c0_12 = arith.constant 0 : index
      %c0_13 = arith.constant 0 : index
      %19 = vector.load %arg12[%c0_12, %c0_13] : memref<128x128xf32, #tpu.memory_space<vmem>>, vector<128x128xf32>
      %20 = vector.broadcast %18 : vector<128x1xf32> to vector<128x128xf32>
      %21 = arith.mulf %20, %19 : vector<128x128xf32>
      %22 = vector.broadcast %15 : f32 to vector<128x128xf32>
      %23 = arith.mulf %22, %21 : vector<128x128xf32>
      %c0_14 = arith.constant 0 : index
      %c0_15 = arith.constant 0 : index
      %24 = vector.load %arg5[%c0_14, %c0_15] : memref<128x128xf32, #tpu.memory_space<vmem>>, vector<128x128xf32>
      %25 = vector.broadcast %16 : f32 to vector<128x128xf32>
      %26 = arith.mulf %25, %24 : vector<128x128xf32>
      %27 = arith.addf %23, %26 : vector<128x128xf32>
      %c0_16 = arith.constant 0 : index
      %c0_17 = arith.constant 0 : index
      %28 = vector.load %arg6[%c0_16, %c0_17] : memref<128x128xf32, #tpu.memory_space<vmem>>, vector<128x128xf32>
      %29 = vector.broadcast %17 : f32 to vector<128x128xf32>
      %30 = arith.mulf %29, %28 : vector<128x128xf32>
      %31 = arith.addf %27, %30 : vector<128x128xf32>
      %c0_18 = arith.constant 0 : index
      %c0_19 = arith.constant 0 : index
      %32 = vector.load %arg10[%c0_18, %c0_19] : memref<128x128xf32, #tpu.memory_space<vmem>>, vector<128x128xf32>
      tpu.vector_store %arg10[%c0_18, %c0_19], %31 {strides = array<i32>} : memref<128x128xf32, #tpu.memory_space<vmem>>, vector<128x128xf32>,
      %c0_20 = arith.constant 0 : index
      %c0_21 = arith.constant 0 : index
      %33 = vector.load %arg9[%c0_20, %c0_21] : memref<128x128xf32, #tpu.memory_space<vmem>>, vector<128x128xf32>
      %c256 = arith.constant 256 : index
      %c0_22 = arith.constant 0 : index
      %34 = vector.load %arg8[%c256, %c0_22] : memref<384x128xf32, #tpu.memory_space<vmem>>, vector<128x128xf32>
      %cst_23 = arith.constant dense<0.000000e+00> : vector<128x128xf32>
      %35 = tpu.matmul %31, %34, %cst_23 {dimension_numbers = #tpu.dot_dimension_numbers<[1], [0], [0], [1], [0, 0, 1, 1], [], []>} : vector<128x128xf32>, vector<128x128xf32>, vector<128x128xf32> -> vector<128x128xf32>
      %36 = arith.addf %33, %35 : vector<128x128xf32>
      %c0_24 = arith.constant 0 : index
      %c0_25 = arith.constant 0 : index
      %37 = vector.load %arg11[%c0_24, %c0_25] : memref<128x128xf32, #tpu.memory_space<vmem>>, vector<128x128xf32>
      tpu.vector_store %arg11[%c0_24, %c0_25], %36 {strides = array<i32>} : memref<128x128xf32, #tpu.memory_space<vmem>>, vector<128x128xf32>,
    } else {
    }
    return
  }
  func.func @transform_0(%arg0: i32, %arg1: i32) -> i32 {
    %c0_i32 = arith.constant 0 : i32
    %c0_i32_0 = arith.constant 0 : i32
    return %c0_i32 : i32
  }
  func.func @transform_1(%arg0: i32, %arg1: i32) -> (i32, i32) {
    %c0_i32 = arith.constant 0 : i32
    return %arg0, %arg1 : i32, i32
  }
  func.func @transform_2(%arg0: i32, %arg1: i32) -> (i32, i32) {
    %c0_i32 = arith.constant 0 : i32
    %c0_i32_0 = arith.constant 0 : i32
    %c0_i32_1 = arith.constant 0 : i32
    return %c0_i32, %c0_i32_0 : i32, i32
  }
  func.func @transform_3(%arg0: i32, %arg1: i32) -> (i32, i32) {
    %c0_i32 = arith.constant 0 : i32
    %c0_i32_0 = arith.constant 0 : i32
    return %arg0, %c0_i32 : i32, i32
  }
  func.func @transform_4(%arg0: i32, %arg1: i32) -> (i32, i32) {
    %c0_i32 = arith.constant 0 : i32
    %c0_i32_0 = arith.constant 0 : i32
    return %arg0, %c0_i32 : i32, i32
  }
  func.func @transform_5(%arg0: i32, %arg1: i32) -> (i32, i32) {
    %c0_i32 = arith.constant 0 : i32
    %c0_i32_0 = arith.constant 0 : i32
    return %arg0, %c0_i32 : i32, i32
  }
  func.func @transform_6(%arg0: i32, %arg1: i32) -> (i32, i32) {
    %c0_i32 = arith.constant 0 : i32
    %c0_i32_0 = arith.constant 0 : i32
    %c0_i32_1 = arith.constant 0 : i32
    return %c0_i32, %c0_i32_0 : i32, i32
  }
  func.func @transform_7(%arg0: i32, %arg1: i32) -> (i32, i32) {
    %c0_i32 = arith.constant 0 : i32
    %c0_i32_0 = arith.constant 0 : i32
    return %arg0, %c0_i32 : i32, i32
  }
  func.func @transform_8(%arg0: i32, %arg1: i32) -> (i32, i32) {
    %c0_i32 = arith.constant 0 : i32
    %c0_i32_0 = arith.constant 0 : i32
    return %arg0, %c0_i32 : i32, i32
  }
  func.func @transform_9(%arg0: i32, %arg1: i32) -> (i32, i32) {
    %c0_i32 = arith.constant 0 : i32
    %c0_i32_0 = arith.constant 0 : i32
    return %arg0, %c0_i32 : i32, i32
  }
}

</mosaic_0001>

<bundles_post_ra>
// kernel: _cheb_conv_impl.2
= control target key start
LH: loop header
LB: loop body
LE: loop exit
PB: predicated region body
PF: predicated region fallthrough
CT: control target
= control target key end

     0   :  { %14 = vsyncpa [#allocation4], 0  ;;  %s872_s30 = smov [#allocation3]   ;;  %s1360_s0 = inlined_call_operand.vmem [shape: f32[2], index: 0, kind: input, shape index: {}]   ;;  %s1361_s1 = inlined_call_operand.vmem [shape: bf16[128,128], index: 1, kind: input, shape index: {}]   ;;  %s1362_s2 = inlined_call_operand.vmem [shape: bf16[128,128], index: 2, kind: input, shape index: {}]   ;;  %s1363_s3 = inlined_call_operand.vmem [shape: f32[128,128], index: 3, kind: input, shape index: {}]   ;;  %s1364_s4 = inlined_call_operand.vmem [shape: f32[128,1], index: 4, kind: input, shape index: {}]   ;;  %s1365_s5 = inlined_call_operand.vmem [shape: f32[384,128], index: 5, kind: input, shape index: {}]   ;;  %s1366_s6 = inlined_call_operand.vmem [shape: f32[1,128], index: 6, kind: input, shape index: {}]   ;;  %s1367_s7 = inlined_call_operand.vmem [shape: f32[128,128], index: 7, kind: output, shape index: {0}]   ;;  %s1368_s8 = inlined_call_operand.vmem [shape: f32[128,128], index: 8, kind: output, shape index: {1}]  }
   0x1   :  { %s20_s29 = sshll.u32 %s1360_s0, 4  ;;  %s21_s29 = int_to_ptr.vmem [resolvable:$true] %s20_s29 }
   0x2   :  { %23 = dma.vmem_to_smem %s21_s29, 16, %s872_s30, [#allocation4]  }
   0x3   :  { %870 = dma.done.wait [#allocation4], 16  }
   0x4   :  { %871 = vsyncadd [#allocation4], 4294967280 }
   0x5   :  { %40 = sfence }
   0x6   :  { %v811_v0 = vld [vmem:[%s1362_s2 + $0x38] sm:$0xff]  ;;  %v312_v1 = vld [vmem:[%s1364_s4] sm:$0xff]  ;;  %v873_v2 = vmov 0   ;;  %v810_v3 = vld [vmem:[%s1362_s2 + $0x30] sm:$0xff]  ;;  %s795_s25 = sld [smem:[#allocation3 + $0x1]] }
   0x7   :  { %854 = vset.pattern.permute.xlu0 %v873_v2  ;;  %855 = vset.pattern.permute.xlu1 %v873_v2  ;;  %v314_v4 = vld [vmem:[%s1364_s4 + $0x10] sm:$0xff]  ;;  %v809_v5 = vld [vmem:[%s1362_s2 + $0x28] sm:$0xff]  ;;  %v315_v7 = vld [vmem:[%s1364_s4 + $0x18] sm:$0xff] }
   0x8   :  { %210 = vmatpush.bf16.msra.mxu0 %v811_v0  ;;  %812 = vmatpush.bf16.msra.mxu3 %v811_v0  ;;  %v313_v6 = vld [vmem:[%s1364_s4 + $0x8] sm:$0xff]  ;;  %v808_v8 = vld [vmem:[%s1362_s2 + $0x20] sm:$0xff]  ;;  %v807_v9 = vld [vmem:[%s1362_s2 + $0x18] sm:$0xff] }
   0x9   :  { %346 = vperm.xlu0 %854, %v312_v1   ;;  %856 = vset.pattern.permute.xlu2 %v873_v2  ;;  %v318_v10 = vld [vmem:[%s1364_s4 + $0x30] sm:$0xff]  ;;  %v319_v11 = vld [vmem:[%s1364_s4 + $0x38] sm:$0xff]  ;;  %v316_v12 = vld [vmem:[%s1364_s4 + $0x20] sm:$0xff] }
   0xa   :  { %356 = vperm.xlu1 %855, %v314_v4   ;;  %v806_v13 = vld [vmem:[%s1362_s2 + $0x10] sm:$0xff]  ;;  %366 = vperm.xlu2 %856, %v316_v12   ;;  %v805_v14 = vld [vmem:[%s1362_s2 + $0x8] sm:$0xff]  ;;  %v324_v15 = vld [vmem:[%s1364_s4 + $0x60] sm:$0xff] }
   0xb   :  { %v321_v16 = vld [vmem:[%s1364_s4 + $0x48] sm:$0xff]  ;;  %v804_v17 = vld [vmem:[%s1362_s2] sm:$0xff]  ;;  %v802_v19 = vld [vmem:[%s1361_s1 + $0x30] sm:$0xff] }
   0xc   :  { %211 = vmatpush.bf16.msra.mxu0 %v810_v3  ;;  %813 = vmatpush.bf16.msra.mxu3 %v810_v3  ;;  %v796_v18 = vld [vmem:[%s1361_s1] sm:$0xff]  ;;  %v322_v20 = vld [vmem:[%s1364_s4 + $0x50] sm:$0xff]  ;;  %v317_v22 = vld [vmem:[%s1364_s4 + $0x28] sm:$0xff] }
   0xd   :  { %v326_v21 = vld [vmem:[%s1364_s4 + $0x70] sm:$0xff]  ;;  %v320_v23 = vld [vmem:[%s1364_s4 + $0x40] sm:$0xff]  ;;  %v327_v24 = vld [vmem:[%s1364_s4 + $0x78] sm:$0xff] }
   0xe   :  { %v797_v25 = vld [vmem:[%s1361_s1 + $0x8] sm:$0xff]  ;;  %v803_v26 = vld [vmem:[%s1361_s1 + $0x38] sm:$0xff]  ;;  %v798_v28 = vld [vmem:[%s1361_s1 + $0x10] sm:$0xff] }
   0xf   :  { %v325_v27 = vld [vmem:[%s1364_s4 + $0x68] sm:$0xff]  ;;  %v323_v29 = vld [vmem:[%s1364_s4 + $0x58] sm:$0xff]  ;;  %v521_v31 = vld [vmem:[%s1365_s5 + $0x70] sm:$0xff] }
  0x10   :  { %212 = vmatpush.bf16.msra.mxu0 %v809_v5  ;;  %814 = vmatpush.bf16.msra.mxu3 %v809_v5  ;;  %v522_v30 = vld [vmem:[%s1365_s5 + $0x78] sm:$0xff]  ;;  %v520_v32 = vld [vmem:[%s1365_s5 + $0x68] sm:$0xff]  ;;  %v519_v34 = vld [vmem:[%s1365_s5 + $0x60] sm:$0xff] }
  0x11   :  { %351 = vperm.xlu0 %854, %v313_v6   ;;  %523 = vmatpush.msra.mxu1 %v522_v30  ;;  %v799_v33 = vld [vmem:[%s1361_s1 + $0x18] sm:$0xff]  ;;  %v517_v36 = vld [vmem:[%s1365_s5 + $0x50] sm:$0xff]  ;;  %v516_v37 = vld [vmem:[%s1365_s5 + $0x48] sm:$0xff] }
  0x12   :  { %361 = vperm.xlu1 %855, %v315_v7   ;;  %371 = vperm.xlu2 %856, %v317_v22   ;;  %v518_v35 = vld [vmem:[%s1365_s5 + $0x58] sm:$0xff]  ;;  %v515_v38 = vld [vmem:[%s1365_s5 + $0x40] sm:$0xff]  ;;  %v513_v41 = vld [vmem:[%s1365_s5 + $0x30] sm:$0xff] }
  0x13   :  { %524 = vmatpush.msra.mxu1 %v521_v31  ;;  %v514_v39 = vld [vmem:[%s1365_s5 + $0x38] sm:$0xff]  ;;  %v800_v40 = vld [vmem:[%s1361_s1 + $0x20] sm:$0xff]  ;;  %v512_v42 = vld [vmem:[%s1365_s5 + $0x28] sm:$0xff] }
  0x14   :  { %213 = vmatpush.bf16.msra.mxu0 %v808_v8  ;;  %815 = vmatpush.bf16.msra.mxu3 %v808_v8  ;;  %v622_v43 = vld [vmem:[%s1365_s5 + $0xf8] sm:$0xff]  ;;  %v511_v44 = vld [vmem:[%s1365_s5 + $0x20] sm:$0xff]  ;;  %v509_v46 = vld [vmem:[%s1365_s5 + $0x10] sm:$0xff] }
  0x15   :  { %525 = vmatpush.msra.mxu1 %v520_v32  ;;  %623 = vmatpush.msra.mxu2 %v622_v43  ;;  %v510_v45 = vld [vmem:[%s1365_s5 + $0x18] sm:$0xff]  ;;  %v508_v47 = vld [vmem:[%s1365_s5 + $0x8] sm:$0xff]  ;;  %v621_v48 = vld [vmem:[%s1365_s5 + $0xf0] sm:$0xff] }
  0x16   :  { %v620_v49 = vld [vmem:[%s1365_s5 + $0xe8] sm:$0xff]  ;;  %v507_v50 = vld [vmem:[%s1365_s5] sm:$0xff]  ;;  %v618_v53 = vld [vmem:[%s1365_s5 + $0xd8] sm:$0xff] }
  0x17   :  { %526 = vmatpush.msra.mxu1 %v519_v34  ;;  %624 = vmatpush.msra.mxu2 %v621_v48  ;;  %v619_v51 = vld [vmem:[%s1365_s5 + $0xe0] sm:$0xff]  ;;  %v801_v54 = vld [vmem:[%s1361_s1 + $0x28] sm:$0xff]  ;;  %v617_v55 = vld [vmem:[%s1365_s5 + $0xd0] sm:$0xff]  ;;  %s294_s1 = sld [smem:[#allocation3]] }
  0x18   :  { %214 = vmatpush.bf16.msra.mxu0 %v807_v9  ;;  %816 = vmatpush.bf16.msra.mxu3 %v807_v9  ;;  %v1078_v52 = vld [vmem:[%s1363_s3 + $0x60] sm:$0xff]  ;;  %v616_v56 = vld [vmem:[%s1365_s5 + $0xc8] sm:$0xff]  ;;  %v614_v59 = vld [vmem:[%s1365_s5 + $0xb8] sm:$0xff] }
  0x19   :  { %376 = vperm.xlu0 %854, %v318_v10   ;;  %527 = vmatpush.msra.mxu1 %v518_v35  ;;  %v615_v57 = vld [vmem:[%s1365_s5 + $0xc0] sm:$0xff]  ;;  %v1099_v58 = vld [vmem:[%s1363_s3 + $0x68] sm:$0xff]  ;;  %v613_v60 = vld [vmem:[%s1365_s5 + $0xb0] sm:$0xff] }
  0x1a   :  { %381 = vperm.xlu1 %855, %v319_v11   ;;  %386 = vperm.xlu2 %856, %v320_v23   ;;  %v612_v61 = vld [vmem:[%s1365_s5 + $0xa8] sm:$0xff]  ;;  %v611_v62 = vld [vmem:[%s1365_s5 + $0xa0] sm:$0xff]  ;;  %v1117_v63 = vld [vmem:[%s1363_s3 + $0x70] sm:$0xff] }
  0x1b   :  { %528 = vmatpush.msra.mxu1 %v517_v36  ;;  %625 = vmatpush.msra.mxu2 %v620_v49  ;;  %v610_v0 = vld [vmem:[%s1365_s5 + $0x98] sm:$0xff]  ;;  %v609_v1 = vld [vmem:[%s1365_s5 + $0x90] sm:$0xff]  ;;  %v296_v2 = vld [vmem:[%s1363_s3] sm:$0xff] }
  0x1c   :  { %215 = vmatpush.bf16.msra.mxu0 %v806_v13  ;;  %817 = vmatpush.bf16.msra.mxu3 %v806_v13  ;;  %v608_v3 = vld [vmem:[%s1365_s5 + $0x88] sm:$0xff]  ;;  %v1135_v4 = vld [vmem:[%s1363_s3 + $0x78] sm:$0xff]  ;;  %v607_v5 = vld [vmem:[%s1365_s5 + $0x80] sm:$0xff] }
  0x1d   :  { %529 = vmatpush.msra.mxu1 %v516_v37  ;;  %626 = vmatpush.msra.mxu2 %v619_v51  ;;  %v297_v7 = vld [vmem:[%s1363_s3 + $0x8] sm:$0xff]  ;;  %v298_v11 = vld [vmem:[%s1363_s3 + $0x10] sm:$0xff]  ;;  %v1168_v23 = vld [vmem:[%s1363_s3 + $0x20] sm:$0xff] }
  0x1f   :  { %530 = vmatpush.msra.mxu1 %v515_v38  ;;  %627 = vmatpush.msra.mxu2 %v618_v53 }
  0x20   :  { %216 = vmatpush.bf16.msra.mxu0 %v805_v14  ;;  %818 = vmatpush.bf16.msra.mxu3 %v805_v14  ;;  %v299_v14 = vld [vmem:[%s1363_s3 + $0x18] sm:$0xff] }
  0x21   :  { %406 = vperm.xlu0 %854, %v324_v15   ;;  %531 = vmatpush.msra.mxu1 %v514_v39 }
  0x22   :  { %391 = vperm.xlu1 %855, %v321_v16   ;;  %411 = vperm.xlu2 %856, %v325_v27   ;;  %v1156_v16 = vstv %s795_s25 }
  0x23   :  { %532 = vmatpush.msra.mxu1 %v513_v41  ;;  %628 = vmatpush.msra.mxu2 %v617_v55 }
  0x24   :  { %217 = vmatpush.bf16.msra.mxu0 %v804_v17  ;;  %819 = vmatpush.bf16.msra.mxu3 %v804_v17 }
  0x25   :  { %533 = vmatpush.msra.mxu1 %v512_v42  ;;  %629 = vmatpush.msra.mxu2 %v616_v56 }
  0x27   :  { %218 = vmatmul.bf16.vlgmr.msra.gmra.mxu0 %v796_v18  ;;  %248 = vmatmul.bf16.vlgmr.msra.gmra.mxu3 %v802_v19  ;;  %v1158_v18 = vstv %s294_s1 }
  0x28   :  { %820 = vmatpush.msrb.mxu3 %v522_v30  ;;  %534 = vmatpush.msra.mxu1 %v511_v44 }
  0x29   :  { %396 = vperm.xlu0 %854, %v322_v20   ;;  %630 = vmatpush.msra.mxu2 %v615_v57  ;;  %v458_v20 = vmul.f32 %v1156_v16, %v296_v2 }
  0x2a   :  { %416 = vperm.xlu1 %855, %v326_v21   ;;  %401 = vperm.xlu2 %856, %v323_v29  }
  0x2b   :  { %821 = vmatpush.msrb.mxu3 %v521_v31  ;;  %535 = vmatpush.msra.mxu1 %v510_v45 }
  0x2c   :  { %631 = vmatpush.msra.mxu2 %v614_v59 }
  0x2d   :  { %822 = vmatpush.msrb.mxu3 %v520_v32  ;;  %536 = vmatpush.msra.mxu1 %v509_v46 }
  0x2e   :  { %632 = vmatpush.msra.mxu2 %v613_v60 }
  0x2f   :  { %823 = vmatpush.msrb.mxu3 %v519_v34  ;;  %537 = vmatpush.msra.mxu1 %v508_v47  ;;  %v1182_v34 = vld [vmem:[%s1363_s3 + $0x28] sm:$0xff] }
  0x30   :  { %633 = vmatpush.msra.mxu2 %v612_v61 }
  0x31   :  { %421 = vperm.xlu0 %854, %v327_v24   ;;  %824 = vmatpush.msrb.mxu3 %v518_v35 }
  0x32   :  { %538 = vmatpush.msra.mxu1 %v507_v50  ;;  %634 = vmatpush.msra.mxu2 %v611_v62 }
  0x33   :  { %825 = vmatpush.msrb.mxu3 %v517_v36  ;;  %539 = vmatmul.f32.vlgmr.msra.gmra.mxu1 %v296_v2  ;;  %v473_v2 = vmul.f32 %v1156_v16, %v1135_v4 }
  0x34   :  { %635 = vmatpush.msra.mxu2 %v610_v0 }
  0x35   :  { %826 = vmatpush.msrb.mxu3 %v516_v37 }
  0x36   :  { %636 = vmatpush.msra.mxu2 %v609_v1 }
  0x37   :  { %223 = vmatmul.bf16.gmra.mxu0 %v797_v25  ;;  %253 = vmatmul.bf16.gmra.mxu3 %v803_v26 }
  0x38   :  { %827 = vmatpush.msrb.mxu3 %v515_v38  ;;  %637 = vmatpush.msra.mxu2 %v608_v3 }
  0x3a   :  { %828 = vmatpush.msrb.mxu3 %v514_v39  ;;  %638 = vmatpush.msra.mxu2 %v607_v5 }
  0x3b   :  { %542 = vmatmul.f32.gmra.mxu1 %v297_v7 }
  0x3c   :  { %829 = vmatpush.msrb.mxu3 %v513_v41  ;;  %v471_v41 = vmul.f32 %v1156_v16, %v1099_v58 }
  0x3e   :  { %830 = vmatpush.msrb.mxu3 %v512_v42 }
  0x40   :  { %831 = vmatpush.msrb.mxu3 %v511_v44 }
  0x42   :  { %832 = vmatpush.msrb.mxu3 %v510_v45 }
  0x43   :  { %545 = vmatmul.f32.gmra.mxu1 %v298_v11 }
  0x44   :  { %833 = vmatpush.msrb.mxu3 %v509_v46  ;;  %v460_v46 = vmul.f32 %v1156_v16, %v298_v11 }
  0x46   :  { %834 = vmatpush.msrb.mxu3 %v508_v47  ;;  %v302_v47 = vld [vmem:[%s1363_s3 + $0x30] sm:$0xff] }
  0x47   :  { %228 = vmatmul.bf16.gmra.mxu0 %v798_v28  ;;  %v470_v28 = vmul.f32 %v1156_v16, %v1078_v52 }
  0x48   :  { %835 = vmatpush.msrb.mxu3 %v507_v50 }
  0x49   :  { %575 = vmatmul.f32.vlgmr.msrb.gmra.mxu3 %v1078_v52 }
  0x4a   :  { %836 = vmatpush.msra.mxu3 %v622_v43 }
  0x4b   :  { %548 = vmatmul.f32.gmra.mxu1 %v299_v14 }
  0x4c   :  { %837 = vmatpush.msra.mxu3 %v621_v48 }
  0x4e   :  { %838 = vmatpush.msra.mxu3 %v620_v49 }
  0x50   :  { %839 = vmatpush.msra.mxu3 %v619_v51 }
  0x51   :  { %578 = vmatmul.f32.gmra.mxu3 %v1099_v58 }
  0x52   :  { %840 = vmatpush.msra.mxu3 %v618_v53 }
  0x53   :  { %551 = vmatmul.f32.gmra.mxu1 %v1168_v23 }
  0x54   :  { %841 = vmatpush.msra.mxu3 %v617_v55 }
  0x56   :  { %842 = vmatpush.msra.mxu3 %v616_v56 }
  0x57   :  { %233 = vmatmul.bf16.gmra.mxu0 %v799_v33  ;;  %v459_v33 = vmul.f32 %v1156_v16, %v297_v7 }
  0x58   :  { %843 = vmatpush.msra.mxu3 %v615_v57 }
  0x59   :  { %581 = vmatmul.f32.gmra.mxu3 %v1117_v63 }
  0x5a   :  { %844 = vmatpush.msra.mxu3 %v614_v59  ;;  %v461_v59 = vmul.f32 %v1156_v16, %v299_v14 }
  0x5b   :  { %554 = vmatmul.f32.gmra.mxu1 %v1182_v34 }
  0x5c   :  { %845 = vmatpush.msra.mxu3 %v613_v60  ;;  %v303_v60 = vld [vmem:[%s1363_s3 + $0x38] sm:$0xff] }
  0x5e   :  { %846 = vmatpush.msra.mxu3 %v612_v61 }
  0x60   :  { %847 = vmatpush.msra.mxu3 %v611_v62 }
  0x61   :  { %584 = vmatmul.f32.gmra.mxu3 %v1135_v4 }
  0x62   :  { %848 = vmatpush.msra.mxu3 %v610_v0 }
  0x63   :  { %557 = vmatmul.f32.gmra.mxu1 %v302_v47 }
  0x64   :  { %849 = vmatpush.msra.mxu3 %v609_v1  ;;  %v1144_v9 = vpop.permute.xlu2 %366 }
  0x66   :  { %850 = vmatpush.msra.mxu3 %v608_v3 }
  0x67   :  { %238 = vmatmul.bf16.gmra.mxu0 %v800_v40 }
  0x68   :  { %851 = vmatpush.msra.mxu3 %v607_v5 }
  0x6b   :  { %560 = vmatmul.f32.gmra.mxu1 %v303_v60 }
  0x6c   :  { %v1149_v13 = vpop.permute.xlu2 %371 }
  0x74   :  { %v1163_v22 = vpop.permute.xlu2 %386 }
  0x77   :  { %243 = vmatmul.bf16.gmra.mxu0 %v801_v54  ;;  %v472_v54 = vmul.f32 %v1156_v16, %v1117_v63 }
  0x7b   :  { %v347_v6 = vpop.permute.xlu0 %346 }
  0x7c   :  { %v357_v8 = vpop.permute.xlu1 %356  ;;  %v412_v38 = vpop.permute.xlu2 %411 }
  0x83   :  { %v352_v10 = vpop.permute.xlu0 %351 }
  0x84   :  { %v362_v12 = vpop.permute.xlu1 %361 }
  0x8b   :  { %v1154_v15 = vpop.permute.xlu0 %376 }
  0x8c   :  { %v1161_v21 = vpop.permute.xlu1 %381 }
  0x93   :  { %v407_v26 = vpop.permute.xlu0 %406 }
  0x94   :  { %v1186_v37 = vpop.permute.xlu1 %391 }
  0x9b   :  { %v1202_v50 = vpop.permute.xlu0 %396 }
  0x9c   :  { %v417_v52 = vpop.permute.xlu1 %416 }
  0xa3   :  { %v422_v0 = vpop.permute.xlu0 %421 }
  0xa4   :  { %v219_v17 = vpop.f32.mrf.mxu0 }
  0xa5   :  { %v424_v19 = vmul.f32 %v347_v6, %v219_v17  ;;  %v463_v17 = vmul.f32 %v1156_v16, %v1182_v34 }
  0xa7   :  { %v441_v24 = vmul.f32 %v1158_v18, %v424_v19  ;;  %v305_v19 = vld [vmem:[%s1363_s3 + $0x48] sm:$0xff] }
  0xa9   :  { %v474_v25 = vadd.f32 %v458_v20, %v441_v24 }
  0xaa   :  { %v249_v27 = vpop.f32.mrf.mxu3 }
  0xab   :  { %v436_v29 = vmul.f32 %v407_v26, %v249_v27  ;;  %490 = vst [vmem:[%s1367_s7] sm:$0xff] %v474_v25  ;;  %639 = vmatmul.f32.vlgmr.msra.gmra.mxu2 %v474_v25  ;;  %v306_v26 = vld [vmem:[%s1363_s3 + $0x50] sm:$0xff] }
  0xac   :  { %v221_v30 = vpop.f32.mrf.mxu0 }
  0xad   :  { %v453_v31 = vmul.f32 %v1158_v18, %v436_v29  ;;  %v425_v32 = vmul.f32 %v352_v10, %v221_v30  ;;  %v304_v10 = vld [vmem:[%s1363_s3 + $0x40] sm:$0xff] }
  0xae   :  { %563 = vmatmul.f32.gmra.mxu1 %v304_v10 }
  0xaf   :  { %v486_v35 = vadd.f32 %v470_v28, %v453_v31  ;;  %v442_v36 = vmul.f32 %v1158_v18, %v425_v32  ;;  %v307_v31 = vld [vmem:[%s1363_s3 + $0x58] sm:$0xff] }
  0xb1   :  { %502 = vst [vmem:[%s1367_s7 + $0x60] sm:$0xff] %v486_v35  ;;  %675 = vmatmul.f32.vlgmr.msra.gmra.mxu3 %v486_v35  ;;  %v475_v39 = vadd.f32 %v459_v33, %v442_v36 }
  0xb2   :  { %v251_v40 = vpop.f32.mrf.mxu3 }
  0xb3   :  { %v437_v42 = vmul.f32 %v412_v38, %v251_v40  ;;  %491 = vst [vmem:[%s1367_s7 + $0x8] sm:$0xff] %v475_v39  ;;  %642 = vmatmul.f32.gmra.mxu2 %v475_v39 }
  0xb4   :  { %v224_v43 = vpop.f32.mrf.mxu0 }
  0xb5   :  { %v454_v44 = vmul.f32 %v1158_v18, %v437_v42  ;;  %v426_v45 = vmul.f32 %v357_v8, %v224_v43  ;;  %v462_v8 = vmul.f32 %v1156_v16, %v1168_v23 }
  0xb6   :  { %566 = vmatmul.f32.gmra.mxu1 %v305_v19 }
  0xb7   :  { %v443_v48 = vmul.f32 %v1158_v18, %v426_v45  ;;  %v487_v49 = vadd.f32 %v471_v41, %v454_v44  ;;  %v467_v41 = vmul.f32 %v1156_v16, %v305_v19  ;;  %v468_v45 = vmul.f32 %v1156_v16, %v306_v26 }
  0xb9   :  { %503 = vst [vmem:[%s1367_s7 + $0x68] sm:$0xff] %v487_v49  ;;  %678 = vmatmul.f32.gmra.mxu3 %v487_v49  ;;  %v476_v51 = vadd.f32 %v460_v46, %v443_v48 }
  0xba   :  { %v254_v53 = vpop.f32.mrf.mxu3 }
  0xbb   :  { %v438_v55 = vmul.f32 %v417_v52, %v254_v53  ;;  %492 = vst [vmem:[%s1367_s7 + $0x10] sm:$0xff] %v476_v51  ;;  %645 = vmatmul.f32.gmra.mxu2 %v476_v51  ;;  %v469_v51 = vmul.f32 %v1156_v16, %v307_v31 }
  0xbc   :  { %v226_v56 = vpop.f32.mrf.mxu0 }
  0xbd   :  { %v455_v57 = vmul.f32 %v1158_v18, %v438_v55  ;;  %v427_v58 = vmul.f32 %v362_v12, %v226_v56 }
  0xbe   :  { %569 = vmatmul.f32.gmra.mxu1 %v306_v26 }
  0xbf   :  { %v444_v61 = vmul.f32 %v1158_v18, %v427_v58  ;;  %v488_v62 = vadd.f32 %v472_v54, %v455_v57  ;;  %v540_v54 = vpop.f32.mrf.mxu1 }
  0xc1   :  { %504 = vst [vmem:[%s1367_s7 + $0x70] sm:$0xff] %v488_v62  ;;  %681 = vmatmul.f32.gmra.mxu3 %v488_v62  ;;  %v477_v63 = vadd.f32 %v461_v59, %v444_v61  ;;  %v1294_v59 = vld [vmem:[%s1366_s6] ss:$0 sm:$0xff] }
  0xc2   :  { %v256_v1 = vpop.f32.mrf.mxu3 }
  0xc3   :  { %v439_v3 = vmul.f32 %v422_v0, %v256_v1  ;;  %493 = vst [vmem:[%s1367_s7 + $0x18] sm:$0xff] %v477_v63  ;;  %648 = vmatmul.f32.gmra.mxu2 %v477_v63 }
  0xc4   :  { %v229_v5 = vpop.f32.mrf.mxu0 }
  0xc5   :  { %v456_v6 = vmul.f32 %v1158_v18, %v439_v3  ;;  %v428_v7 = vmul.f32 %v1144_v9, %v229_v5 }
  0xc6   :  { %572 = vmatmul.f32.gmra.mxu1 %v307_v31 }
  0xc7   :  { %v445_v4 = vmul.f32 %v1158_v18, %v428_v7  ;;  %v489_v11 = vadd.f32 %v473_v2, %v456_v6  ;;  %v543_v56 = vpop.f32.mrf.mxu1 }
  0xc8   :  { %v592_v0 = vadd.f32 %v1294_v59, %v543_v56 }
  0xc9   :  { %505 = vst [vmem:[%s1367_s7 + $0x78] sm:$0xff] %v489_v11  ;;  %684 = vmatmul.f32.gmra.mxu3 %v489_v11  ;;  %v478_v12 = vadd.f32 %v462_v8, %v445_v4 }
  0xcb   :  { %494 = vst [vmem:[%s1367_s7 + $0x20] sm:$0xff] %v478_v12  ;;  %651 = vmatmul.f32.gmra.mxu2 %v478_v12 }
  0xcc   :  { %v231_v9 = vpop.f32.mrf.mxu0 }
  0xcd   :  { %v429_v14 = vmul.f32 %v1149_v13, %v231_v9  ;;  %v464_v13 = vmul.f32 %v1156_v16, %v302_v47 }
  0xcf   :  { %v446_v20 = vmul.f32 %v1158_v18, %v429_v14  ;;  %v546_v58 = vpop.f32.mrf.mxu1 }
  0xd0   :  { %v593_v8 = vadd.f32 %v1294_v59, %v546_v58 }
  0xd1   :  { %v479_v23 = vadd.f32 %v463_v17, %v446_v20 }
  0xd3   :  { %495 = vst [vmem:[%s1367_s7 + $0x28] sm:$0xff] %v479_v23  ;;  %654 = vmatmul.f32.gmra.mxu2 %v479_v23 }
  0xd4   :  { %v234_v24 = vpop.f32.mrf.mxu0 }
  0xd5   :  { %v430_v25 = vmul.f32 %v1154_v15, %v234_v24  ;;  %v465_v15 = vmul.f32 %v1156_v16, %v303_v60 }
  0xd7   :  { %v447_v27 = vmul.f32 %v1158_v18, %v430_v25  ;;  %v549_v62 = vpop.f32.mrf.mxu1 }
  0xd8   :  { %v594_v14 = vadd.f32 %v1294_v59, %v549_v62 }
  0xd9   :  { %v480_v28 = vadd.f32 %v464_v13, %v447_v27 }
  0xdb   :  { %496 = vst [vmem:[%s1367_s7 + $0x30] sm:$0xff] %v480_v28  ;;  %657 = vmatmul.f32.gmra.mxu2 %v480_v28 }
  0xdc   :  { %v236_v29 = vpop.f32.mrf.mxu0 }
  0xdd   :  { %v431_v30 = vmul.f32 %v1161_v21, %v236_v29  ;;  %v466_v21 = vmul.f32 %v1156_v16, %v304_v10 }
  0xdf   :  { %v448_v32 = vmul.f32 %v1158_v18, %v431_v30  ;;  %v552_v7 = vpop.f32.mrf.mxu1 }
  0xe0   :  { %v595_v13 = vadd.f32 %v1294_v59, %v552_v7 }
  0xe1   :  { %v481_v33 = vadd.f32 %v465_v15, %v448_v32 }
  0xe3   :  { %497 = vst [vmem:[%s1367_s7 + $0x38] sm:$0xff] %v481_v33  ;;  %660 = vmatmul.f32.gmra.mxu2 %v481_v33 }
  0xe4   :  { %v239_v34 = vpop.f32.mrf.mxu0 }
  0xe5   :  { %v432_v35 = vmul.f32 %v1163_v22, %v239_v34 }
  0xe7   :  { %v449_v36 = vmul.f32 %v1158_v18, %v432_v35  ;;  %v555_v19 = vpop.f32.mrf.mxu1 }
  0xe8   :  { %v596_v15 = vadd.f32 %v1294_v59, %v555_v19 }
  0xe9   :  { %v482_v38 = vadd.f32 %v466_v21, %v449_v36 }
  0xeb   :  { %498 = vst [vmem:[%s1367_s7 + $0x40] sm:$0xff] %v482_v38  ;;  %663 = vmatmul.f32.gmra.mxu2 %v482_v38 }
  0xec   :  { %v241_v39 = vpop.f32.mrf.mxu0 }
  0xed   :  { %v433_v40 = vmul.f32 %v1186_v37, %v241_v39  ;;  %v402_v37 = vpop.permute.xlu2 %401 }
  0xef   :  { %v450_v42 = vmul.f32 %v1158_v18, %v433_v40  ;;  %v558_v29 = vpop.f32.mrf.mxu1 }
  0xf0   :  { %v597_v34 = vadd.f32 %v1294_v59, %v558_v29 }
  0xf1   :  { %v483_v43 = vadd.f32 %v467_v41, %v450_v42 }
  0xf3   :  { %499 = vst [vmem:[%s1367_s7 + $0x48] sm:$0xff] %v483_v43  ;;  %666 = vmatmul.f32.gmra.mxu2 %v483_v43 }
  0xf4   :  { %v244_v22 = vpop.f32.mrf.mxu0 }
  0xf5   :  { %v434_v44 = vmul.f32 %v1202_v50, %v244_v22  ;;  %v576_v50 = vpop.f32.mrf.mxu3 }
  0xf6   :  { %v603_v63 = vadd.f32 %v1294_v59, %v576_v50 }
  0xf7   :  { %v451_v46 = vmul.f32 %v1158_v18, %v434_v44  ;;  %v561_v33 = vpop.f32.mrf.mxu1 }
  0xf8   :  { %v598_v38 = vadd.f32 %v1294_v59, %v561_v33 }
  0xf9   :  { %v484_v47 = vadd.f32 %v468_v45, %v451_v46 }
  0xfb   :  { %500 = vst [vmem:[%s1367_s7 + $0x50] sm:$0xff] %v484_v47  ;;  %669 = vmatmul.f32.gmra.mxu2 %v484_v47 }
  0xfc   :  { %v246_v48 = vpop.f32.mrf.mxu0 }
  0xfd   :  { %v435_v49 = vmul.f32 %v402_v37, %v246_v48  ;;  %v579_v55 = vpop.f32.mrf.mxu3 }
  0xfe   :  { %v604_v6 = vadd.f32 %v1294_v59, %v579_v55 }
  0xff   :  { %v452_v52 = vmul.f32 %v1158_v18, %v435_v49  ;;  %v591_v18 = vadd.f32 %v1294_v59, %v540_v54 }
 0x101   :  { %v485_v53 = vadd.f32 %v469_v51, %v452_v52 }
 0x103   :  { %501 = vst [vmem:[%s1367_s7 + $0x58] sm:$0xff] %v485_v53  ;;  %672 = vmatmul.f32.gmra.mxu2 %v485_v53 }
 0x105   :  { %v582_v57 = vpop.f32.mrf.mxu3 }
 0x106   :  { %v605_v9 = vadd.f32 %v1294_v59, %v582_v57 }
 0x10d   :  { %v585_v16 = vpop.f32.mrf.mxu3 }
 0x10e   :  { %v606_v25 = vadd.f32 %v1294_v59, %v585_v16 }
 0x12b   :  { %v564_v36 = vpop.f32.mrf.mxu1 }
 0x12c   :  { %v599_v41 = vadd.f32 %v1294_v59, %v564_v36 }
 0x12e   :  { %v640_v60 = vpop.f32.mrf.mxu2 }
 0x12f   :  { %v688_v61 = vadd.f32 %v640_v60, %v591_v18 }
 0x131   :  { %704 = vst [vmem:[%s1368_s8] sm:$0xff] %v688_v61 }
 0x133   :  { %v567_v42 = vpop.f32.mrf.mxu1 }
 0x134   :  { %v676_v1 = vpop.f32.mrf.mxu3  ;;  %v600_v44 = vadd.f32 %v1294_v59, %v567_v42 }
 0x135   :  { %v700_v2 = vadd.f32 %v676_v1, %v603_v63 }
 0x136   :  { %v643_v3 = vpop.f32.mrf.mxu2 }
 0x137   :  { %716 = vst [vmem:[%s1368_s8 + $0x60] sm:$0xff] %v700_v2  ;;  %v689_v5 = vadd.f32 %v643_v3, %v592_v0 }
 0x139   :  { %705 = vst [vmem:[%s1368_s8 + $0x8] sm:$0xff] %v689_v5 }
 0x13b   :  { %v570_v46 = vpop.f32.mrf.mxu1 }
 0x13c   :  { %v679_v10 = vpop.f32.mrf.mxu3  ;;  %v601_v37 = vadd.f32 %v1294_v59, %v570_v46 }
 0x13d   :  { %v701_v4 = vadd.f32 %v679_v10, %v604_v6 }
 0x13e   :  { %v646_v11 = vpop.f32.mrf.mxu2 }
 0x13f   :  { %717 = vst [vmem:[%s1368_s8 + $0x68] sm:$0xff] %v701_v4  ;;  %v690_v12 = vadd.f32 %v646_v11, %v593_v8 }
 0x141   :  { %706 = vst [vmem:[%s1368_s8 + $0x10] sm:$0xff] %v690_v12 }
 0x143   :  { %v573_v51 = vpop.f32.mrf.mxu1 }
 0x144   :  { %v682_v17 = vpop.f32.mrf.mxu3  ;;  %v602_v52 = vadd.f32 %v1294_v59, %v573_v51 }
 0x145   :  { %v702_v20 = vadd.f32 %v682_v17, %v605_v9 }
 0x146   :  { %v649_v23 = vpop.f32.mrf.mxu2 }
 0x147   :  { %718 = vst [vmem:[%s1368_s8 + $0x70] sm:$0xff] %v702_v20  ;;  %v691_v24 = vadd.f32 %v649_v23, %v594_v14 }
 0x149   :  { %707 = vst [vmem:[%s1368_s8 + $0x18] sm:$0xff] %v691_v24 }
 0x14c   :  { %v685_v26 = vpop.f32.mrf.mxu3 }
 0x14d   :  { %v703_v27 = vadd.f32 %v685_v26, %v606_v25 }
 0x14e   :  { %v652_v28 = vpop.f32.mrf.mxu2 }
 0x14f   :  { %719 = vst [vmem:[%s1368_s8 + $0x78] sm:$0xff] %v703_v27  ;;  %v692_v30 = vadd.f32 %v652_v28, %v595_v13 }
 0x151   :  { %708 = vst [vmem:[%s1368_s8 + $0x20] sm:$0xff] %v692_v30 }
 0x156   :  { %v655_v31 = vpop.f32.mrf.mxu2 }
 0x157   :  { %v693_v32 = vadd.f32 %v655_v31, %v596_v15 }
 0x159   :  { %709 = vst [vmem:[%s1368_s8 + $0x28] sm:$0xff] %v693_v32 }
 0x15e   :  { %v658_v35 = vpop.f32.mrf.mxu2 }
 0x15f   :  { %v694_v21 = vadd.f32 %v658_v35, %v597_v34 }
 0x161   :  { %710 = vst [vmem:[%s1368_s8 + $0x30] sm:$0xff] %v694_v21 }
 0x166   :  { %v661_v39 = vpop.f32.mrf.mxu2 }
 0x167   :  { %v695_v40 = vadd.f32 %v661_v39, %v598_v38 }
 0x169   :  { %711 = vst [vmem:[%s1368_s8 + $0x38] sm:$0xff] %v695_v40 }
 0x16e   :  { %v664_v43 = vpop.f32.mrf.mxu2 }
 0x16f   :  { %v696_v22 = vadd.f32 %v664_v43, %v599_v41 }
 0x171   :  { %712 = vst [vmem:[%s1368_s8 + $0x40] sm:$0xff] %v696_v22 }
 0x176   :  { %v667_v45 = vpop.f32.mrf.mxu2 }
 0x177   :  { %v697_v47 = vadd.f32 %v667_v45, %v600_v44 }
 0x179   :  { %713 = vst [vmem:[%s1368_s8 + $0x48] sm:$0xff] %v697_v47 }
 0x17e   :  { %v670_v48 = vpop.f32.mrf.mxu2 }
 0x17f   :  { %v698_v49 = vadd.f32 %v670_v48, %v601_v37 }
 0x181   :  { %714 = vst [vmem:[%s1368_s8 + $0x50] sm:$0xff] %v698_v49 }
 0x186   :  { %v673_v53 = vpop.f32.mrf.mxu2 }
 0x187   :  { %v699_v50 = vadd.f32 %v673_v53, %v602_v52 }
 0x189   :  { %715 = vst [vmem:[%s1368_s8 + $0x58] sm:$0xff] %v699_v50 }
 0x18a   :  { %728 = vsyncpa [#allocation4], 1 }

// kernel: _cheb_conv_impl.3
= control target key start
LH: loop header
LB: loop body
LE: loop exit
PB: predicated region body
PF: predicated region fallthrough
CT: control target
= control target key end

     0   :  { %15 = vsyncpa [#allocation5], 0  ;;  %s1319_s0 = inlined_call_operand.vmem [shape: f32[3], index: 0, kind: input, shape index: {}]   ;;  %s1320_s1 = inlined_call_operand.vmem [shape: bf16[128,128], index: 1, kind: input, shape index: {}]   ;;  %s1321_s2 = inlined_call_operand.vmem [shape: bf16[128,128], index: 2, kind: input, shape index: {}]   ;;  %s1322_s3 = inlined_call_operand.vmem [shape: f32[128,128], index: 3, kind: input, shape index: {}]   ;;  %s1323_s4 = inlined_call_operand.vmem [shape: f32[128,128], index: 4, kind: input, shape index: {}]   ;;  %s1324_s5 = inlined_call_operand.vmem [shape: f32[128,1], index: 5, kind: input, shape index: {}]   ;;  %s1325_s6 = inlined_call_operand.vmem [shape: f32[384,128], index: 6, kind: input, shape index: {}]   ;;  %s1326_s7 = inlined_call_operand.vmem [shape: f32[128,128], index: 7, kind: input, shape index: {}, may-alias: {7,9}]   ;;  %s1327_s8 = inlined_call_operand.hbm [shape: f32[128,128], index: 8, kind: output, shape index: {0}]   ;;  %s1328_s9 = inlined_call_operand.vmem [shape: f32[128,128], index: 9, kind: output, shape index: {1}, may-alias: {7,9}]  }
   0x1   :  { %16 = vsyncpa [#allocation4], 0  ;;  %s22_s11 = sshll.u32 %s1319_s0, 4  ;;  %s868_s12 = smov [#allocation3]   ;;  %s23_s11 = int_to_ptr.vmem [resolvable:$true] %s22_s11 }
   0x2   :  { %25 = dma.vmem_to_smem %s23_s11, 16, %s868_s12, [#allocation5]  }
   0x3   :  { %864 = dma.done.wait [#allocation5], 16  }
   0x4   :  { %865 = vsyncadd [#allocation5], 4294967280 }
   0x5   :  { %44 = sfence }
   0x6   :  { %v795_v0 = vld [vmem:[%s1321_s2 + $0x38] sm:$0xff]  ;;  %v309_v1 = vld [vmem:[%s1324_s5 + $0x40] sm:$0xff]  ;;  %v869_v2 = vmov 0   ;;  %v794_v3 = vld [vmem:[%s1321_s2 + $0x30] sm:$0xff]  ;;  %s298_s15 = sld [smem:[#allocation3]]  ;;  %s695_s29 = sshll.u32 %s1327_s8, 4  ;;  %s696_s29 = int_to_ptr.hbm [resolvable:$true] %s695_s29 }
   0x7   :  { %825 = vset.pattern.permute.xlu0 %v869_v2  ;;  %826 = vset.pattern.permute.xlu1 %v869_v2  ;;  %v310_v4 = vld [vmem:[%s1324_s5 + $0x48] sm:$0xff]  ;;  %v301_v6 = vld [vmem:[%s1324_s5] sm:$0xff]  ;;  %v791_v9 = vld [vmem:[%s1321_s2 + $0x18] sm:$0xff]  ;;  %s779_s16 = sld [smem:[#allocation3 + $0x2]]  ;;  %s871_s30 = smov 128  }
   0x8   :  { %214 = vmatpush.bf16.msra.mxu0 %v795_v0  ;;  %796 = vmatpush.bf16.msra.mxu2 %v795_v0  ;;  %v793_v5 = vld [vmem:[%s1321_s2 + $0x28] sm:$0xff]  ;;  %v792_v8 = vld [vmem:[%s1321_s2 + $0x20] sm:$0xff]  ;;  %v312_v10 = vld [vmem:[%s1324_s5 + $0x58] sm:$0xff] }
   0x9   :  { %375 = vperm.xlu0 %825, %v309_v1   ;;  %380 = vperm.xlu1 %826, %v310_v4   ;;  %v302_v7 = vld [vmem:[%s1324_s5 + $0x8] sm:$0xff]  ;;  %v304_v11 = vld [vmem:[%s1324_s5 + $0x18] sm:$0xff]  ;;  %v311_v12 = vld [vmem:[%s1324_s5 + $0x50] sm:$0xff] }
   0xa   :  { %827 = vset.pattern.permute.xlu2 %v869_v2  ;;  %v790_v13 = vld [vmem:[%s1321_s2 + $0x10] sm:$0xff]  ;;  %v789_v14 = vld [vmem:[%s1321_s2 + $0x8] sm:$0xff]  ;;  %v305_v15 = vld [vmem:[%s1324_s5 + $0x20] sm:$0xff] }
   0xb   :  { %385 = vperm.xlu2 %827, %v311_v12   ;;  %v314_v16 = vld [vmem:[%s1324_s5 + $0x68] sm:$0xff]  ;;  %v303_v17 = vld [vmem:[%s1324_s5 + $0x10] sm:$0xff]  ;;  %v788_v18 = vld [vmem:[%s1321_s2] sm:$0xff] }
   0xc   :  { %215 = vmatpush.bf16.msra.mxu0 %v794_v3  ;;  %797 = vmatpush.bf16.msra.mxu2 %v794_v3  ;;  %v780_v19 = vld [vmem:[%s1320_s1] sm:$0xff]  ;;  %v315_v21 = vld [vmem:[%s1324_s5 + $0x70] sm:$0xff]  ;;  %v308_v24 = vld [vmem:[%s1324_s5 + $0x38] sm:$0xff]  ;;  %v1075_v55 = vstv %s298_s15 }
   0xd   :  { %v784_v20 = vld [vmem:[%s1320_s1 + $0x20] sm:$0xff]  ;;  %v307_v22 = vld [vmem:[%s1324_s5 + $0x30] sm:$0xff]  ;;  %v306_v25 = vld [vmem:[%s1324_s5 + $0x28] sm:$0xff]  ;;  %v1080_v57 = vstv %s779_s16 }
   0xe   :  { %v313_v23 = vld [vmem:[%s1324_s5 + $0x60] sm:$0xff]  ;;  %v781_v26 = vld [vmem:[%s1320_s1 + $0x8] sm:$0xff]  ;;  %v316_v28 = vld [vmem:[%s1324_s5 + $0x78] sm:$0xff]  ;;  %s872_s5 = smov 8  }
   0xf   :  { %v785_v27 = vld [vmem:[%s1320_s1 + $0x28] sm:$0xff]  ;;  %v782_v29 = vld [vmem:[%s1320_s1 + $0x10] sm:$0xff]  ;;  %v783_v31 = vld [vmem:[%s1320_s1 + $0x18] sm:$0xff] }
  0x10   :  { %216 = vmatpush.bf16.msra.mxu0 %v793_v5  ;;  %798 = vmatpush.bf16.msra.mxu2 %v793_v5  ;;  %v786_v30 = vld [vmem:[%s1320_s1 + $0x30] sm:$0xff]  ;;  %v787_v32 = vld [vmem:[%s1320_s1 + $0x38] sm:$0xff]  ;;  %v589_v35 = vld [vmem:[%s1325_s6 + $0x168] sm:$0xff]  ;;  %s778_s1 = sld [smem:[#allocation3 + $0x1]] }
  0x11   :  { %335 = vperm.xlu0 %825, %v301_v6   ;;  %340 = vperm.xlu1 %826, %v302_v7   ;;  %v591_v33 = vld [vmem:[%s1325_s6 + $0x178] sm:$0xff]  ;;  %v590_v34 = vld [vmem:[%s1325_s6 + $0x170] sm:$0xff]  ;;  %v588_v36 = vld [vmem:[%s1325_s6 + $0x160] sm:$0xff] }
  0x12   :  { %592 = vmatpush.msra.mxu1 %v591_v33  ;;  %804 = vmatpush.msra.mxu3 %v591_v33  ;;  %v587_v37 = vld [vmem:[%s1325_s6 + $0x158] sm:$0xff]  ;;  %v586_v38 = vld [vmem:[%s1325_s6 + $0x150] sm:$0xff]  ;;  %v585_v39 = vld [vmem:[%s1325_s6 + $0x148] sm:$0xff] }
  0x13   :  { %345 = vperm.xlu2 %827, %v303_v17   ;;  %v584_v40 = vld [vmem:[%s1325_s6 + $0x140] sm:$0xff]  ;;  %v583_v41 = vld [vmem:[%s1325_s6 + $0x138] sm:$0xff]  ;;  %v582_v42 = vld [vmem:[%s1325_s6 + $0x130] sm:$0xff] }
  0x14   :  { %217 = vmatpush.bf16.msra.mxu0 %v792_v8  ;;  %799 = vmatpush.bf16.msra.mxu2 %v792_v8  ;;  %v581_v43 = vld [vmem:[%s1325_s6 + $0x128] sm:$0xff]  ;;  %v580_v44 = vld [vmem:[%s1325_s6 + $0x120] sm:$0xff]  ;;  %v579_v45 = vld [vmem:[%s1325_s6 + $0x118] sm:$0xff] }
  0x15   :  { %593 = vmatpush.msra.mxu1 %v590_v34  ;;  %805 = vmatpush.msra.mxu3 %v590_v34  ;;  %v578_v46 = vld [vmem:[%s1325_s6 + $0x110] sm:$0xff]  ;;  %v577_v47 = vld [vmem:[%s1325_s6 + $0x108] sm:$0xff]  ;;  %v576_v48 = vld [vmem:[%s1325_s6 + $0x100] sm:$0xff] }
  0x16   :  { %v446_v51 = vld [vmem:[%s1322_s3] sm:$0xff]  ;;  %v1073_v52 = vstv %s778_s1  ;;  %v447_v3 = vld [vmem:[%s1322_s3 + $0x8] sm:$0xff] }
  0x17   :  { %594 = vmatpush.msra.mxu1 %v589_v35  ;;  %806 = vmatpush.msra.mxu3 %v589_v35  ;;  %v495_v56 = vld [vmem:[%s1323_s4] sm:$0xff]  ;;  %v463_v59 = vmul.f32 %v1073_v52, %v446_v51  ;;  %v455_v17 = vld [vmem:[%s1322_s3 + $0x48] sm:$0xff] }
  0x18   :  { %218 = vmatpush.bf16.msra.mxu0 %v791_v9  ;;  %800 = vmatpush.bf16.msra.mxu2 %v791_v9  ;;  %v512_v61 = vmul.f32 %v1080_v57, %v495_v56  ;;  %v454_v62 = vld [vmem:[%s1322_s3 + $0x40] sm:$0xff] }
  0x19   :  { %390 = vperm.xlu0 %825, %v312_v10   ;;  %350 = vperm.xlu1 %826, %v304_v11   ;;  %v503_v0 = vld [vmem:[%s1323_s4 + $0x40] sm:$0xff]  ;;  %v471_v6 = vmul.f32 %v1073_v52, %v454_v62  ;;  %v496_v10 = vld [vmem:[%s1323_s4 + $0x8] sm:$0xff]  ;;  %v506_v62 = vld [vmem:[%s1323_s4 + $0x58] sm:$0xff] }
  0x1a   :  { %595 = vmatpush.msra.mxu1 %v588_v36  ;;  %807 = vmatpush.msra.mxu3 %v588_v36  ;;  %v520_v9 = vmul.f32 %v1080_v57, %v503_v0  ;;  %v456_v36 = vld [vmem:[%s1322_s3 + $0x50] sm:$0xff] }
  0x1b   :  { %395 = vperm.xlu2 %827, %v313_v23  }
  0x1c   :  { %219 = vmatpush.bf16.msra.mxu0 %v790_v13  ;;  %801 = vmatpush.bf16.msra.mxu2 %v790_v13  ;;  %v464_v13 = vmul.f32 %v1073_v52, %v447_v3 }
  0x1d   :  { %596 = vmatpush.msra.mxu1 %v587_v37  ;;  %808 = vmatpush.msra.mxu3 %v587_v37 }
  0x1f   :  { %597 = vmatpush.msra.mxu1 %v586_v38  ;;  %809 = vmatpush.msra.mxu3 %v586_v38 }
  0x20   :  { %220 = vmatpush.bf16.msra.mxu0 %v789_v14  ;;  %802 = vmatpush.bf16.msra.mxu2 %v789_v14 }
  0x21   :  { %355 = vperm.xlu0 %825, %v305_v15   ;;  %400 = vperm.xlu1 %826, %v314_v16   ;;  %v513_v16 = vmul.f32 %v1080_v57, %v496_v10 }
  0x22   :  { %598 = vmatpush.msra.mxu1 %v585_v39  ;;  %810 = vmatpush.msra.mxu3 %v585_v39  ;;  %v505_v39 = vld [vmem:[%s1323_s4 + $0x50] sm:$0xff] }
  0x23   :  { %360 = vperm.xlu2 %827, %v306_v25   ;;  %v472_v25 = vmul.f32 %v1073_v52, %v455_v17 }
  0x24   :  { %221 = vmatpush.bf16.msra.mxu0 %v788_v18  ;;  %803 = vmatpush.bf16.msra.mxu2 %v788_v18 }
  0x25   :  { %599 = vmatpush.msra.mxu1 %v584_v40  ;;  %811 = vmatpush.msra.mxu3 %v584_v40 }
  0x27   :  { %222 = vmatmul.bf16.vlgmr.msra.gmra.mxu0 %v780_v19  ;;  %242 = vmatmul.bf16.vlgmr.msra.gmra.mxu2 %v784_v20  ;;  %v504_v20 = vld [vmem:[%s1323_s4 + $0x48] sm:$0xff] }
  0x28   :  { %600 = vmatpush.msra.mxu1 %v583_v41  ;;  %812 = vmatpush.msra.mxu3 %v583_v41 }
  0x29   :  { %405 = vperm.xlu0 %825, %v315_v21   ;;  %365 = vperm.xlu1 %826, %v307_v22   ;;  %v448_v22 = vld [vmem:[%s1322_s3 + $0x10] sm:$0xff] }
  0x2a   :  { %601 = vmatpush.msra.mxu1 %v582_v42  ;;  %813 = vmatpush.msra.mxu3 %v582_v42  ;;  %v449_v42 = vld [vmem:[%s1322_s3 + $0x18] sm:$0xff] }
  0x2b   :  { %410 = vperm.xlu2 %827, %v316_v28   ;;  %v521_v28 = vmul.f32 %v1080_v57, %v504_v20 }
  0x2c   :  { %602 = vmatpush.msra.mxu1 %v581_v43  ;;  %814 = vmatpush.msra.mxu3 %v581_v43 }
  0x2e   :  { %603 = vmatpush.msra.mxu1 %v580_v44  ;;  %815 = vmatpush.msra.mxu3 %v580_v44 }
  0x30   :  { %604 = vmatpush.msra.mxu1 %v579_v45  ;;  %816 = vmatpush.msra.mxu3 %v579_v45  ;;  %v473_v45 = vmul.f32 %v1073_v52, %v456_v36 }
  0x31   :  { %370 = vperm.xlu0 %825, %v308_v24  }
  0x32   :  { %605 = vmatpush.msra.mxu1 %v578_v46  ;;  %817 = vmatpush.msra.mxu3 %v578_v46 }
  0x34   :  { %606 = vmatpush.msra.mxu1 %v577_v47  ;;  %818 = vmatpush.msra.mxu3 %v577_v47 }
  0x36   :  { %607 = vmatpush.msra.mxu1 %v576_v48  ;;  %819 = vmatpush.msra.mxu3 %v576_v48  ;;  %v522_v48 = vmul.f32 %v1080_v57, %v505_v39 }
  0x37   :  { %227 = vmatmul.bf16.gmra.mxu0 %v781_v26  ;;  %247 = vmatmul.bf16.gmra.mxu2 %v785_v27 }
  0x47   :  { %232 = vmatmul.bf16.gmra.mxu0 %v782_v29  ;;  %252 = vmatmul.bf16.gmra.mxu2 %v786_v30  ;;  %v497_v29 = vld [vmem:[%s1323_s4 + $0x10] sm:$0xff] }
  0x48   :  { %v514_v35 = vmul.f32 %v1080_v57, %v497_v29 }
  0x57   :  { %237 = vmatmul.bf16.gmra.mxu0 %v783_v31  ;;  %257 = vmatmul.bf16.gmra.mxu2 %v787_v32  ;;  %v465_v32 = vmul.f32 %v1073_v52, %v448_v22 }
  0x65   :  { %v386_v1 = vpop.permute.xlu2 %385 }
  0x6d   :  { %v346_v26 = vpop.permute.xlu2 %345 }
  0x7b   :  { %v376_v49 = vpop.permute.xlu0 %375  ;;  %v381_v50 = vpop.permute.xlu1 %380 }
  0x83   :  { %v336_v53 = vpop.permute.xlu0 %335  ;;  %v341_v7 = vpop.permute.xlu1 %340 }
  0x8b   :  { %v391_v40 = vpop.permute.xlu0 %390  ;;  %v351_v46 = vpop.permute.xlu1 %350 }
  0xa4   :  { %v223_v54 = vpop.f32.mrf.mxu0 }
  0xa5   :  { %v413_v58 = vmul.f32 %v336_v53, %v223_v54  ;;  %v466_v53 = vmul.f32 %v1073_v52, %v449_v42 }
  0xa7   :  { %v430_v60 = vmul.f32 %v1075_v55, %v413_v58 }
  0xa9   :  { %v479_v63 = vadd.f32 %v463_v59, %v430_v60  ;;  %v457_v59 = vld [vmem:[%s1322_s3 + $0x58] sm:$0xff] }
  0xaa   :  { %v243_v2 = vpop.f32.mrf.mxu2 }
  0xab   :  { %v421_v4 = vmul.f32 %v376_v49, %v243_v2  ;;  %v528_v5 = vadd.f32 %v512_v61, %v479_v63  ;;  %v498_v49 = vld [vmem:[%s1323_s4 + $0x18] sm:$0xff]  ;;  %v396_v63 = vpop.permute.xlu2 %395 }
  0xac   :  { %v225_v8 = vpop.f32.mrf.mxu0  ;;  %v515_v58 = vmul.f32 %v1080_v57, %v498_v49 }
  0xad   :  { %v438_v11 = vmul.f32 %v1075_v55, %v421_v4  ;;  %v414_v12 = vmul.f32 %v341_v7, %v225_v8  ;;  %544 = vst [vmem:[#allocation6] sm:$0xff] %v528_v5  ;;  %608 = vmatmul.f32.vlgmr.msra.gmra.mxu1 %v528_v5  ;;  %v474_v4 = vmul.f32 %v1073_v52, %v457_v59  ;;  %v356_v5 = vpop.permute.xlu0 %355  ;;  %v499_v8 = vld [vmem:[%s1323_s4 + $0x20] sm:$0xff] }
  0xae   :  { %v523_v7 = vmul.f32 %v1080_v57, %v506_v62 }
  0xaf   :  { %v431_v14 = vmul.f32 %v1075_v55, %v414_v12  ;;  %v487_v15 = vadd.f32 %v471_v6, %v438_v11 }
  0xb1   :  { %v536_v18 = vadd.f32 %v520_v9, %v487_v15  ;;  %v480_v19 = vadd.f32 %v464_v13, %v431_v14  ;;  %v516_v14 = vmul.f32 %v1080_v57, %v499_v8  ;;  %v458_v15 = vld [vmem:[%s1322_s3 + $0x60] sm:$0xff] }
  0xb2   :  { %v245_v21 = vpop.f32.mrf.mxu2 }
  0xb3   :  { %v422_v23 = vmul.f32 %v381_v50, %v245_v21  ;;  %552 = vst [vmem:[#allocation6 + $0x40] sm:$0xff] %v536_v18  ;;  %632 = vmatmul.f32.vlgmr.msra.gmra.mxu3 %v536_v18  ;;  %v529_v24 = vadd.f32 %v513_v16, %v480_v19  ;;  %v507_v18 = vld [vmem:[%s1323_s4 + $0x60] sm:$0xff]  ;;  %v401_v19 = vpop.permute.xlu1 %400  ;;  %v451_v21 = vld [vmem:[%s1322_s3 + $0x28] sm:$0xff] }
  0xb4   :  { %v228_v27 = vpop.f32.mrf.mxu0 }
  0xb5   :  { %v439_v30 = vmul.f32 %v1075_v55, %v422_v23  ;;  %v415_v31 = vmul.f32 %v346_v26, %v228_v27  ;;  %545 = vst [vmem:[#allocation6 + $0x8] sm:$0xff] %v529_v24  ;;  %611 = vmatmul.f32.gmra.mxu1 %v529_v24  ;;  %v475_v24 = vmul.f32 %v1073_v52, %v458_v15  ;;  %v406_v39 = vpop.permute.xlu0 %405 }
  0xb6   :  { %v524_v27 = vmul.f32 %v1080_v57, %v507_v18  ;;  %v510_v18 = vld [vmem:[%s1323_s4 + $0x78] sm:$0xff] }
  0xb7   :  { %v432_v33 = vmul.f32 %v1075_v55, %v415_v31  ;;  %v488_v34 = vadd.f32 %v472_v25, %v439_v30  ;;  %v361_v25 = vpop.permute.xlu2 %360  ;;  %v468_v31 = vmul.f32 %v1073_v52, %v451_v21 }
  0xb9   :  { %v537_v37 = vadd.f32 %v521_v28, %v488_v34  ;;  %v481_v38 = vadd.f32 %v465_v32, %v432_v33  ;;  %v500_v28 = vld [vmem:[%s1323_s4 + $0x28] sm:$0xff] }
  0xba   :  { %v248_v41 = vpop.f32.mrf.mxu2  ;;  %v517_v34 = vmul.f32 %v1080_v57, %v500_v28 }
  0xbb   :  { %v423_v43 = vmul.f32 %v386_v1, %v248_v41  ;;  %553 = vst [vmem:[#allocation6 + $0x48] sm:$0xff] %v537_v37  ;;  %635 = vmatmul.f32.gmra.mxu3 %v537_v37  ;;  %v530_v44 = vadd.f32 %v514_v35, %v481_v38  ;;  %v450_v1 = vld [vmem:[%s1322_s3 + $0x20] sm:$0xff]  ;;  %v459_v35 = vld [vmem:[%s1322_s3 + $0x68] sm:$0xff]  ;;  %v452_v41 = vld [vmem:[%s1322_s3 + $0x30] sm:$0xff] }
  0xbc   :  { %v230_v47 = vpop.f32.mrf.mxu0  ;;  %v467_v11 = vmul.f32 %v1073_v52, %v450_v1  ;;  %v508_v38 = vld [vmem:[%s1323_s4 + $0x68] sm:$0xff] }
  0xbd   :  { %v440_v50 = vmul.f32 %v1075_v55, %v423_v43  ;;  %v416_v51 = vmul.f32 %v351_v46, %v230_v47  ;;  %546 = vst [vmem:[#allocation6 + $0x10] sm:$0xff] %v530_v44  ;;  %614 = vmatmul.f32.gmra.mxu1 %v530_v44  ;;  %v476_v44 = vmul.f32 %v1073_v52, %v459_v35 }
  0xbe   :  { %v525_v47 = vmul.f32 %v1080_v57, %v508_v38 }
  0xbf   :  { %v433_v54 = vmul.f32 %v1075_v55, %v416_v51  ;;  %v489_v56 = vadd.f32 %v473_v45, %v440_v50  ;;  %v366_v45 = vpop.permute.xlu1 %365  ;;  %v469_v51 = vmul.f32 %v1073_v52, %v452_v41 }
  0xc1   :  { %v538_v60 = vadd.f32 %v522_v48, %v489_v56  ;;  %v482_v61 = vadd.f32 %v466_v53, %v433_v54  ;;  %v501_v48 = vld [vmem:[%s1323_s4 + $0x30] sm:$0xff] }
  0xc2   :  { %v250_v0 = vpop.f32.mrf.mxu2  ;;  %v518_v56 = vmul.f32 %v1080_v57, %v501_v48 }
  0xc3   :  { %v424_v2 = vmul.f32 %v391_v40, %v250_v0  ;;  %554 = vst [vmem:[#allocation6 + $0x50] sm:$0xff] %v538_v60  ;;  %638 = vmatmul.f32.gmra.mxu3 %v538_v60  ;;  %v531_v3 = vadd.f32 %v515_v58, %v482_v61  ;;  %v460_v58 = vld [vmem:[%s1322_s3 + $0x70] sm:$0xff] }
  0xc4   :  { %v233_v6 = vpop.f32.mrf.mxu0  ;;  %v509_v61 = vld [vmem:[%s1323_s4 + $0x70] sm:$0xff] }
  0xc5   :  { %v441_v9 = vmul.f32 %v1075_v55, %v424_v2  ;;  %v417_v10 = vmul.f32 %v356_v5, %v233_v6  ;;  %547 = vst [vmem:[#allocation6 + $0x18] sm:$0xff] %v531_v3  ;;  %617 = vmatmul.f32.gmra.mxu1 %v531_v3  ;;  %v477_v2 = vmul.f32 %v1073_v52, %v460_v58  ;;  %v371_v3 = vpop.permute.xlu0 %370  ;;  %v502_v6 = vld [vmem:[%s1323_s4 + $0x38] sm:$0xff] }
  0xc6   :  { %v526_v5 = vmul.f32 %v1080_v57, %v509_v61 }
  0xc7   :  { %v434_v12 = vmul.f32 %v1075_v55, %v417_v10  ;;  %v490_v13 = vadd.f32 %v474_v4, %v441_v9 }
  0xc9   :  { %v539_v16 = vadd.f32 %v523_v7, %v490_v13  ;;  %v483_v17 = vadd.f32 %v467_v11, %v434_v12  ;;  %v519_v12 = vmul.f32 %v1080_v57, %v502_v6  ;;  %v461_v13 = vld [vmem:[%s1322_s3 + $0x78] sm:$0xff] }
  0xca   :  { %v253_v20 = vpop.f32.mrf.mxu2  ;;  %v478_v21 = vmul.f32 %v1073_v52, %v461_v13 }
  0xcb   :  { %v425_v22 = vmul.f32 %v396_v63, %v253_v20  ;;  %555 = vst [vmem:[#allocation6 + $0x58] sm:$0xff] %v539_v16  ;;  %641 = vmatmul.f32.gmra.mxu3 %v539_v16  ;;  %v532_v23 = vadd.f32 %v516_v14, %v483_v17  ;;  %v453_v63 = vld [vmem:[%s1322_s3 + $0x38] sm:$0xff]  ;;  %v411_v16 = vpop.permute.xlu2 %410  ;;  %s870_s3 = smov [#allocation6]  }
  0xcc   :  { %v235_v26 = vpop.f32.mrf.mxu0  ;;  %v470_v9 = vmul.f32 %v1073_v52, %v453_v63  ;;  %s693_s27 = sshll.u32 %s870_s3, 4  ;;  %v560_v52 = vld [vmem:[%s1326_s7] sm:$0xff]  ;;  %s694_s27 = int_to_ptr.vmem [resolvable:$true] %s693_s27 }
  0xcd   :  { %v442_v29 = vmul.f32 %v1075_v55, %v425_v22  ;;  %v418_v30 = vmul.f32 %v361_v25, %v235_v26  ;;  %548 = vst [vmem:[#allocation6 + $0x20] sm:$0xff] %v532_v23  ;;  %620 = vmatmul.f32.gmra.mxu1 %v532_v23  ;;  %v527_v23 = vmul.f32 %v1080_v57, %v510_v18 }
  0xcf   :  { %v435_v32 = vmul.f32 %v1075_v55, %v418_v30  ;;  %v491_v33 = vadd.f32 %v475_v24, %v442_v29 }
  0xd1   :  { %v540_v36 = vadd.f32 %v524_v27, %v491_v33  ;;  %v484_v37 = vadd.f32 %v468_v31, %v435_v32 }
  0xd2   :  { %v255_v40 = vpop.f32.mrf.mxu2 }
  0xd3   :  { %v426_v42 = vmul.f32 %v401_v19, %v255_v40  ;;  %556 = vst [vmem:[#allocation6 + $0x60] sm:$0xff] %v540_v36  ;;  %644 = vmatmul.f32.gmra.mxu3 %v540_v36  ;;  %v533_v43 = vadd.f32 %v517_v34, %v484_v37 }
  0xd4   :  { %v238_v46 = vpop.f32.mrf.mxu0 }
  0xd5   :  { %v443_v49 = vmul.f32 %v1075_v55, %v426_v42  ;;  %v419_v50 = vmul.f32 %v366_v45, %v238_v46  ;;  %549 = vst [vmem:[#allocation6 + $0x28] sm:$0xff] %v533_v43  ;;  %623 = vmatmul.f32.gmra.mxu1 %v533_v43 }
  0xd7   :  { %v436_v53 = vmul.f32 %v1075_v55, %v419_v50  ;;  %v492_v54 = vadd.f32 %v476_v44, %v443_v49 }
  0xd9   :  { %v541_v59 = vadd.f32 %v525_v47, %v492_v54  ;;  %v485_v60 = vadd.f32 %v469_v51, %v436_v53 }
  0xda   :  { %v258_v62 = vpop.f32.mrf.mxu2 }
  0xdb   :  { %v427_v0 = vmul.f32 %v406_v39, %v258_v62  ;;  %557 = vst [vmem:[#allocation6 + $0x68] sm:$0xff] %v541_v59  ;;  %647 = vmatmul.f32.gmra.mxu3 %v541_v59  ;;  %v534_v1 = vadd.f32 %v518_v56, %v485_v60 }
  0xdc   :  { %v240_v4 = vpop.f32.mrf.mxu0 }
  0xdd   :  { %v444_v7 = vmul.f32 %v1075_v55, %v427_v0  ;;  %v420_v8 = vmul.f32 %v371_v3, %v240_v4  ;;  %550 = vst [vmem:[#allocation6 + $0x30] sm:$0xff] %v534_v1  ;;  %626 = vmatmul.f32.gmra.mxu1 %v534_v1 }
  0xdf   :  { %v437_v10 = vmul.f32 %v1075_v55, %v420_v8  ;;  %v493_v11 = vadd.f32 %v477_v2, %v444_v7 }
  0xe1   :  { %v542_v14 = vadd.f32 %v526_v5, %v493_v11  ;;  %v486_v15 = vadd.f32 %v470_v9, %v437_v10 }
  0xe2   :  { %v260_v17 = vpop.f32.mrf.mxu2 }
  0xe3   :  { %v428_v19 = vmul.f32 %v411_v16, %v260_v17  ;;  %558 = vst [vmem:[#allocation6 + $0x70] sm:$0xff] %v542_v14  ;;  %650 = vmatmul.f32.gmra.mxu3 %v542_v14  ;;  %v535_v20 = vadd.f32 %v519_v12, %v486_v15 }
  0xe5   :  { %v445_v22 = vmul.f32 %v1075_v55, %v428_v19  ;;  %551 = vst [vmem:[#allocation6 + $0x38] sm:$0xff] %v535_v20  ;;  %629 = vmatmul.f32.gmra.mxu1 %v535_v20 }
  0xe7   :  { %v494_v24 = vadd.f32 %v478_v21, %v445_v22 }
  0xe9   :  { %v543_v25 = vadd.f32 %v527_v23, %v494_v24 }
  0xeb   :  { %559 = vst [vmem:[#allocation6 + $0x78] sm:$0xff] %v543_v25  ;;  %653 = vmatmul.f32.gmra.mxu3 %v543_v25 }
  0xec   :  { %701 = dma.vmem_to_hbm [thread:$0]  %s694_s27, 2048, %s696_s29, [#allocation4], %s871_s30, %s871_s30, %s872_s5  }
 0x12a   :  { %v609_v55 = vpop.f32.mrf.mxu1 }
 0x12b   :  { %v657_v57 = vadd.f32 %v609_v55, %v560_v52 }
 0x12d   :  { %673 = vst [vmem:[%s1328_s9] sm:$0xff] %v657_v57 }
 0x132   :  { %v612_v27 = vpop.f32.mrf.mxu1 }
 0x134   :  { %v561_v26 = vld [vmem:[%s1326_s7 + $0x8] sm:$0xff]  ;;  %v568_v29 = vld [vmem:[%s1326_s7 + $0x40] sm:$0xff] }
 0x135   :  { %v658_v28 = vadd.f32 %v612_v27, %v561_v26 }
 0x136   :  { %v633_v30 = vpop.f32.mrf.mxu3 }
 0x137   :  { %674 = vst [vmem:[%s1328_s9 + $0x8] sm:$0xff] %v658_v28  ;;  %v665_v31 = vadd.f32 %v633_v30, %v568_v29 }
 0x13a   :  { %v615_v33 = vpop.f32.mrf.mxu1 }
 0x13e   :  { %v562_v32 = vld [vmem:[%s1326_s7 + $0x10] sm:$0xff]  ;;  %v636_v36 = vpop.f32.mrf.mxu3 }
 0x13f   :  { %681 = vst [vmem:[%s1328_s9 + $0x40] sm:$0xff] %v665_v31  ;;  %v659_v34 = vadd.f32 %v615_v33, %v562_v32 }
 0x142   :  { %v618_v39 = vpop.f32.mrf.mxu1 }
 0x146   :  { %v569_v35 = vld [vmem:[%s1326_s7 + $0x48] sm:$0xff]  ;;  %v639_v42 = vpop.f32.mrf.mxu3 }
 0x147   :  { %675 = vst [vmem:[%s1328_s9 + $0x10] sm:$0xff] %v659_v34  ;;  %v666_v37 = vadd.f32 %v636_v36, %v569_v35 }
 0x14a   :  { %v621_v45 = vpop.f32.mrf.mxu1 }
 0x14e   :  { %v563_v38 = vld [vmem:[%s1326_s7 + $0x18] sm:$0xff]  ;;  %v642_v48 = vpop.f32.mrf.mxu3 }
 0x14f   :  { %682 = vst [vmem:[%s1328_s9 + $0x48] sm:$0xff] %v666_v37  ;;  %v660_v40 = vadd.f32 %v618_v39, %v563_v38 }
 0x152   :  { %v624_v51 = vpop.f32.mrf.mxu1 }
 0x156   :  { %v570_v41 = vld [vmem:[%s1326_s7 + $0x50] sm:$0xff]  ;;  %v645_v56 = vpop.f32.mrf.mxu3 }
 0x157   :  { %676 = vst [vmem:[%s1328_s9 + $0x18] sm:$0xff] %v660_v40  ;;  %v667_v43 = vadd.f32 %v639_v42, %v570_v41 }
 0x15a   :  { %v627_v60 = vpop.f32.mrf.mxu1 }
 0x15e   :  { %v564_v44 = vld [vmem:[%s1326_s7 + $0x20] sm:$0xff]  ;;  %v648_v63 = vpop.f32.mrf.mxu3 }
 0x15f   :  { %683 = vst [vmem:[%s1328_s9 + $0x50] sm:$0xff] %v667_v43  ;;  %v661_v46 = vadd.f32 %v621_v45, %v564_v44 }
 0x162   :  { %v630_v2 = vpop.f32.mrf.mxu1 }
 0x166   :  { %v571_v47 = vld [vmem:[%s1326_s7 + $0x58] sm:$0xff]  ;;  %v651_v5 = vpop.f32.mrf.mxu3 }
 0x167   :  { %677 = vst [vmem:[%s1328_s9 + $0x20] sm:$0xff] %v661_v46  ;;  %v668_v49 = vadd.f32 %v642_v48, %v571_v47 }
 0x16e   :  { %v565_v50 = vld [vmem:[%s1326_s7 + $0x28] sm:$0xff]  ;;  %v654_v8 = vpop.f32.mrf.mxu3 }
 0x16f   :  { %684 = vst [vmem:[%s1328_s9 + $0x58] sm:$0xff] %v668_v49  ;;  %v662_v53 = vadd.f32 %v624_v51, %v565_v50 }
 0x176   :  { %v572_v54 = vld [vmem:[%s1326_s7 + $0x60] sm:$0xff] }
 0x177   :  { %678 = vst [vmem:[%s1328_s9 + $0x28] sm:$0xff] %v662_v53  ;;  %v669_v58 = vadd.f32 %v645_v56, %v572_v54 }
 0x17e   :  { %v566_v59 = vld [vmem:[%s1326_s7 + $0x30] sm:$0xff] }
 0x17f   :  { %685 = vst [vmem:[%s1328_s9 + $0x60] sm:$0xff] %v669_v58  ;;  %v663_v61 = vadd.f32 %v627_v60, %v566_v59 }
 0x186   :  { %v573_v62 = vld [vmem:[%s1326_s7 + $0x68] sm:$0xff] }
 0x187   :  { %679 = vst [vmem:[%s1328_s9 + $0x30] sm:$0xff] %v663_v61  ;;  %v670_v0 = vadd.f32 %v648_v63, %v573_v62 }
 0x18e   :  { %v567_v1 = vld [vmem:[%s1326_s7 + $0x38] sm:$0xff] }
 0x18f   :  { %686 = vst [vmem:[%s1328_s9 + $0x68] sm:$0xff] %v670_v0  ;;  %v664_v3 = vadd.f32 %v630_v2, %v567_v1 }
 0x196   :  { %v574_v4 = vld [vmem:[%s1326_s7 + $0x70] sm:$0xff] }
 0x197   :  { %680 = vst [vmem:[%s1328_s9 + $0x38] sm:$0xff] %v664_v3  ;;  %v671_v6 = vadd.f32 %v651_v5, %v574_v4 }
 0x199   :  { %687 = vst [vmem:[%s1328_s9 + $0x70] sm:$0xff] %v671_v6 }
 0x1a0   :  { %v575_v7 = vld [vmem:[%s1326_s7 + $0x78] sm:$0xff] }
 0x1a1   :  { %v672_v9 = vadd.f32 %v654_v8, %v575_v7 }
 0x1a3   :  { %688 = vst [vmem:[%s1328_s9 + $0x78] sm:$0xff] %v672_v9 }
 0x1a4   :  { %866 = dma.done.wait [#allocation4], 2048  }
 0x1a5   :  { %867 = vsyncadd [#allocation4], 4294965248 }
 0x1a6   :  { %710 = vsyncpa [#allocation4], 1 }
 0x1a7   :  { %711 = vsyncpa [#allocation5], 1 }

</bundles_post_ra>
